<compile_context>
chip_gen: v7x
topology: tpu7x:2x2x1
jax: 0.10.0
libtpu: 0.0.40
codegen_flags: <defaults>
</compile_context>

<pallas_src>
import jax
import jax.numpy as jnp
from jax import lax
from jax.experimental import pallas as pl
from jax.experimental.pallas import tpu as pltpu

MIN_NORM = 1e-15
BALL_EPS = 4e-3      # PoincareBall proj eps for float32


# ---------------------------------------------------------------------------
# Poincare-ball math helpers (value-level jnp -> usable inside the kernel).
# Norms are passed through / derived analytically instead of being recomputed.
# ---------------------------------------------------------------------------
def _artanh(x):
    x = jnp.clip(x, -1.0 + 1e-7, 1.0 - 1e-7)
    return 0.5 * (jnp.log1p(x) - jnp.log1p(-x))


def _tanh(x):
    return jnp.tanh(jnp.clip(x, -15.0, 15.0))


def _proj_with_norm(x, norm, maxnorm):
    """Project onto the ball; `norm` is the already-known row norm of x."""
    over = norm > maxnorm
    scale = jnp.where(over, maxnorm * pl.reciprocal(norm, approx=True), 1.0)
    return x * scale, jnp.where(over, maxnorm, norm)


def _expmap0_proj(u, sqrt_c, inv_sqrt_c, maxnorm):
    """proj(expmap0(u)); returns (point, row norm).  One cross-lane reduce."""
    u_sq = jnp.sum(u * u, axis=-1, keepdims=True)
    u_norm = jnp.maximum(jnp.sqrt(u_sq), MIN_NORM)
    t = _tanh(sqrt_c * u_norm)
    g = (t * pl.reciprocal(sqrt_c * u_norm, approx=True)) * u
    g_norm = jnp.maximum(t * inv_sqrt_c, MIN_NORM)        # analytic ||g||
    return _proj_with_norm(g, g_norm, maxnorm)


def _hnn_layer(x, x_norm, w, b_row, c, sqrt_c, inv_sqrt_c, maxnorm):
    """One HNN layer = HypLinear (mobius_matvec + hyperbolic bias) + HypAct.
    Single shared curvature c (matches the PyTorch module).  dropout == 0."""
    # ---- HypLinear: mobius_matvec (reuse caller-provided x_norm) ----
    mx = jnp.dot(x, w, preferred_element_type=jnp.float32)           # (N,Fout) MXU
    mx_sq = jnp.sum(mx * mx, axis=-1, keepdims=True)                 # reduce 1
    degenerate = mx_sq <= 0.0                                        # all-zero rows
    mx_norm = jnp.maximum(jnp.sqrt(mx_sq), MIN_NORM)
    t = _tanh(mx_norm * pl.reciprocal(x_norm, approx=True) * _artanh(sqrt_c * x_norm))
    mv = jnp.where(degenerate, 0.0,
                   (t * pl.reciprocal(sqrt_c * mx_norm, approx=True)) * mx)
    mv_norm = jnp.maximum(jnp.where(degenerate, 0.0, t * inv_sqrt_c), MIN_NORM)
    mv, mv_norm = _proj_with_norm(mv, mv_norm, maxnorm)

    # hyperbolic bias: proj(expmap0(proj_tan0(b)))                    (1,Fout)
    hb, hb_norm = _expmap0_proj(b_row, sqrt_c, inv_sqrt_c, maxnorm)

    # mobius_add(mv, hb) + proj, with the result norm derived analytically
    # from x2 / y2 / xy (no extra reduce).
    x2 = mv_norm * mv_norm
    y2 = hb_norm * hb_norm
    xy = jnp.sum(mv * hb, axis=-1, keepdims=True)                    # reduce 2
    a_co = 1.0 + 2.0 * c * xy + c * y2
    b_co = 1.0 - c * x2
    denom = 1.0 + 2.0 * c * xy + c * c * x2 * y2
    inv_denom = pl.reciprocal(jnp.maximum(denom, MIN_NORM), approx=True)
    h = (a_co * mv + b_co * hb) * inv_denom
    num_sq = jnp.maximum(a_co * a_co * x2 + 2.0 * a_co * b_co * xy
                         + b_co * b_co * y2, 0.0)
    h_norm = jnp.maximum(jnp.sqrt(num_sq) * inv_denom, MIN_NORM)
    h, h_norm = _proj_with_norm(h, h_norm, maxnorm)

    # ---- HypAct: activation in the tangent space at the origin ----
    # TODO(synk): the HNN layer's activation is not given in the spec; ReLU assumed.
    log0 = (_artanh(sqrt_c * h_norm) * pl.reciprocal(sqrt_c * h_norm, approx=True)) * h
    xt = jnp.maximum(log0, 0.0)
    return _expmap0_proj(xt, sqrt_c, inv_sqrt_c, maxnorm)            # reduce 3


# ---------------------------------------------------------------------------
# Fused forward kernel: one launch, everything VMEM-resident.
# ---------------------------------------------------------------------------
def _hnn_forward_kernel(c_ref, bfc_ref,
                        x_ref, w1_ref, b1_ref, w2_ref, b2_ref,
                        u_ref, imat_ref, wu_ref, wi_ref,
                        o_ref):
    c = c_ref[0]
    sqrt_c = jnp.sqrt(c)
    inv_sqrt_c = 1.0 / sqrt_c
    maxnorm = (1.0 - BALL_EPS) * inv_sqrt_c          # hoisted once per kernel

    # encoder: proj(expmap0(proj_tan0(item_features)))   (proj_tan0 = identity)
    h, h_norm = _expmap0_proj(x_ref[...], sqrt_c, inv_sqrt_c, maxnorm)

    # conv1, conv2 (shared curvature c)
    h, h_norm = _hnn_layer(h, h_norm, w1_ref[...], b1_ref[...],
                           c, sqrt_c, inv_sqrt_c, maxnorm)
    h, h_norm = _hnn_layer(h, h_norm, w2_ref[...], b2_ref[...],
                           c, sqrt_c, inv_sqrt_c, maxnorm)

    # proj_tan0(logmap0(conv2_out)) : back to the tangent space at the origin
    i_tan = (_artanh(sqrt_c * h_norm)
             * pl.reciprocal(sqrt_c * h_norm, approx=True)) * h       # (N, dim)

    # fc1(cat(u_emb, i @ i_tan)) + sigmoid, computed transposed so the output
    # is lane-dense (1, B):  logit^T = w_u @ u^T + (w_i @ i_tan^T) @ i^T + b.
    dn = (((1,), (1,)), ((), ()))        # contract on the feature axis of both
    u_term = lax.dot_general(wu_ref[...], u_ref[...], dn,
                             preferred_element_type=jnp.float32)      # (1, B)
    zi = lax.dot_general(wi_ref[...], i_tan, dn,
                         preferred_element_type=jnp.float32)          # (1, N)
    i_term = lax.dot_general(zi, imat_ref[...], dn,
                             preferred_element_type=jnp.float32)      # (1, B)
    logit = u_term + i_term + bfc_ref[0]
    o_ref[...] = 1.0 / (1.0 + jnp.exp(-logit))


# ---------------------------------------------------------------------------
# Wrapper: embedding gathers + fc1 weight split are XLA glue; one pallas_call.
# ---------------------------------------------------------------------------
_SMEM = pl.BlockSpec(memory_space=pltpu.MemorySpace.SMEM)
_VMEM = pl.BlockSpec(memory_space=pltpu.MemorySpace.VMEM)


def hnn_forward(params, u_ids, i_mat, graph_x):
    u_emb = params["user_table"][u_ids]          # (B, dim)      glue gather
    item_feat = params["item_table"][graph_x]    # (N, hidden_1) glue gather
    b = u_emb.shape[0]
    dim = u_emb.shape[1]
    w_fc = params["fc1_w"]                       # (1, 2*dim) — PyTorch layout
    w_u = w_fc[:, :dim]                          # user half
    w_i = w_fc[:, dim:]                          # item half

    out_1b = pl.pallas_call(
        _hnn_forward_kernel,
        out_shape=jax.ShapeDtypeStruct((1, b), jnp.float32),   # lane-dense
        in_specs=[_SMEM, _SMEM] + [_VMEM] * 9,
        out_specs=_VMEM,
    )(params["c"], params["fc1_b"],
      item_feat,
      params["w1_t"], params["b1"].reshape(1, -1),
      params["w2_t"], params["b2"].reshape(1, -1),
      u_emb, i_mat, w_u, w_i)
    return jnp.transpose(out_1b)                 # (B, 1), matches nn.Module output


# ---------------------------------------------------------------------------
if __name__ == "__main__":
    B, dim, hidden_1, hidden_2 = 2, 8, 16, 16
    u_nodes, i_nodes, n_graph = 10, 12, 12

    key = jax.random.PRNGKey(0)
    k = jax.random.split(key, 10)

    params = {
        "user_table": jax.random.normal(k[0], (u_nodes, dim), jnp.float32),
        "item_table": jax.random.normal(k[1], (i_nodes, hidden_1), jnp.float32),
        # HypLinear weights are (out, in) in PyTorch; stored pre-transposed.
        "w1_t": (jax.random.normal(k[2], (hidden_2, hidden_1), jnp.float32) * 0.1).T,
        "b1": jax.random.normal(k[3], (hidden_2,), jnp.float32) * 0.1,
        "w2_t": (jax.random.normal(k[4], (dim, hidden_2), jnp.float32) * 0.1).T,
        "b2": jax.random.normal(k[5], (dim,), jnp.float32) * 0.1,
        "fc1_w": jax.random.normal(k[6], (1, 2 * dim), jnp.float32) * 0.1,
        "fc1_b": jnp.zeros((1,), jnp.float32),
        "c": jnp.array([1.0], jnp.float32),      # shared learnable curvature
    }

    # Inputs: user ids, item selection matrix `i`, graph.x (item node ids).
    u = jax.random.randint(k[7], (B,), 0, u_nodes)
    graph_x = jnp.arange(n_graph, dtype=jnp.int32)
    i_mat = jax.random.uniform(k[8], (B, n_graph), jnp.float32)

    out = hnn_forward(params, u, i_mat, graph_x)
    jax.block_until_ready(out)
    assert out.shape == (B, 1)
    assert bool(jnp.all(jnp.isfinite(out)))
    print("KERNEL_OK")
</pallas_src>

<mosaic_0001>
module attributes {stable_mosaic.version = 11 : i64} {
  func.func @_hnn_forward_kernel(%arg0: memref<1xf32, #tpu.memory_space<smem>>, %arg1: memref<1xf32, #tpu.memory_space<smem>>, %arg2: memref<12x16xf32, #tpu.memory_space<vmem>>, %arg3: memref<16x16xf32, #tpu.memory_space<vmem>>, %arg4: memref<1x16xf32, #tpu.memory_space<vmem>>, %arg5: memref<16x8xf32, #tpu.memory_space<vmem>>, %arg6: memref<1x8xf32, #tpu.memory_space<vmem>>, %arg7: memref<2x8xf32, #tpu.memory_space<vmem>>, %arg8: memref<2x12xf32, #tpu.memory_space<vmem>>, %arg9: memref<1x8xf32, #tpu.memory_space<vmem>>, %arg10: memref<1x8xf32, #tpu.memory_space<vmem>>, %arg11: memref<1x2xf32, #tpu.memory_space<vmem>>) attributes {dimension_semantics = [], scalar_prefetch = 0 : i64, scratch_operands = 0 : i64, tpu.core_type = #tpu.core_type<tc>} {
    %c0 = arith.constant 0 : index
    %0 = memref.load %arg0[%c0] : memref<1xf32, #tpu.memory_space<smem>>
    %1 = math.sqrt %0 : f32
    %cst = arith.constant 1.000000e+00 : f32
    %2 = arith.divf %cst, %1 : f32
    %cst_0 = arith.constant 0.995999991 : f32
    %3 = arith.mulf %cst_0, %2 : f32
    %c0_1 = arith.constant 0 : index
    %c0_2 = arith.constant 0 : index
    %4 = vector.load %arg2[%c0_1, %c0_2] : memref<12x16xf32, #tpu.memory_space<vmem>>, vector<12x16xf32>
    %5 = arith.mulf %4, %4 : vector<12x16xf32>
    %cst_3 = arith.constant dense<0.000000e+00> : vector<12xf32>
    %6 = vector.multi_reduction <add>, %5, %cst_3 [1] : vector<12x16xf32> to vector<12xf32>
    %7 = vector.shape_cast %6 : vector<12xf32> to vector<12x1xf32>
    %8 = math.sqrt %7 : vector<12x1xf32>
    %cst_4 = arith.constant 1.000000e-15 : f32
    %9 = vector.broadcast %cst_4 : f32 to vector<12x1xf32>
    %10 = arith.maximumf %8, %9 : vector<12x1xf32>
    %11 = vector.broadcast %1 : f32 to vector<12x1xf32>
    %12 = arith.mulf %11, %10 : vector<12x1xf32>
    %cst_5 = arith.constant -1.500000e+01 : f32
    %cst_6 = arith.constant 1.500000e+01 : f32
    %13 = vector.broadcast %cst_5 : f32 to vector<12x1xf32>
    %14 = arith.maximumf %13, %12 : vector<12x1xf32>
    %15 = vector.broadcast %cst_6 : f32 to vector<12x1xf32>
    %16 = arith.minimumf %15, %14 : vector<12x1xf32>
    %17 = math.tanh %16 : vector<12x1xf32>
    %18 = vector.broadcast %1 : f32 to vector<12x1xf32>
    %19 = arith.mulf %18, %10 : vector<12x1xf32>
    %20 = tpu.reciprocal %19 {approx = true} : vector<12x1xf32> -> vector<12x1xf32>
    %21 = arith.mulf %17, %20 : vector<12x1xf32>
    %22 = vector.broadcast %21 : vector<12x1xf32> to vector<12x16xf32>
    %23 = arith.mulf %22, %4 : vector<12x16xf32>
    %24 = vector.broadcast %2 : f32 to vector<12x1xf32>
    %25 = arith.mulf %17, %24 : vector<12x1xf32>
    %cst_7 = arith.constant 1.000000e-15 : f32
    %26 = vector.broadcast %cst_7 : f32 to vector<12x1xf32>
    %27 = arith.maximumf %25, %26 : vector<12x1xf32>
    %28 = vector.broadcast %3 : f32 to vector<12x1xf32>
    %29 = arith.cmpf ogt, %27, %28 : vector<12x1xf32>
    %30 = tpu.reciprocal %27 {approx = true} : vector<12x1xf32> -> vector<12x1xf32>
    %31 = vector.broadcast %3 : f32 to vector<12x1xf32>
    %32 = arith.mulf %31, %30 : vector<12x1xf32>
    %cst_8 = arith.constant 1.000000e+00 : f32
    %33 = vector.broadcast %cst_8 : f32 to vector<12x1xf32>
    %34 = arith.select %29, %32, %33 : vector<12x1xi1>, vector<12x1xf32>
    %35 = vector.broadcast %34 : vector<12x1xf32> to vector<12x16xf32>
    %36 = arith.mulf %23, %35 : vector<12x16xf32>
    %37 = vector.broadcast %3 : f32 to vector<12x1xf32>
    %38 = arith.select %29, %37, %27 : vector<12x1xi1>, vector<12x1xf32>
    %c0_9 = arith.constant 0 : index
    %c0_10 = arith.constant 0 : index
    %39 = vector.load %arg3[%c0_9, %c0_10] : memref<16x16xf32, #tpu.memory_space<vmem>>, vector<16x16xf32>
    %c0_11 = arith.constant 0 : index
    %c0_12 = arith.constant 0 : index
    %40 = vector.load %arg4[%c0_11, %c0_12] : memref<1x16xf32, #tpu.memory_space<vmem>>, vector<1x16xf32>
    %cst_13 = arith.constant dense<0.000000e+00> : vector<12x16xf32>
    %41 = tpu.matmul %36, %39, %cst_13 {dimension_numbers = #tpu.dot_dimension_numbers<[1], [0], [0], [1], [0, 0, 1, 1], [], []>} : vector<12x16xf32>, vector<16x16xf32>, vector<12x16xf32> -> vector<12x16xf32>
    %42 = arith.mulf %41, %41 : vector<12x16xf32>
    %cst_14 = arith.constant dense<0.000000e+00> : vector<12xf32>
    %43 = vector.multi_reduction <add>, %42, %cst_14 [1] : vector<12x16xf32> to vector<12xf32>
    %44 = vector.shape_cast %43 : vector<12xf32> to vector<12x1xf32>
    %cst_15 = arith.constant 0.000000e+00 : f32
    %45 = vector.broadcast %cst_15 : f32 to vector<12x1xf32>
    %46 = arith.cmpf ole, %44, %45 : vector<12x1xf32>
    %47 = math.sqrt %44 : vector<12x1xf32>
    %cst_16 = arith.constant 1.000000e-15 : f32
    %48 = vector.broadcast %cst_16 : f32 to vector<12x1xf32>
    %49 = arith.maximumf %47, %48 : vector<12x1xf32>
    %50 = tpu.reciprocal %38 {approx = true} : vector<12x1xf32> -> vector<12x1xf32>
    %51 = arith.mulf %49, %50 : vector<12x1xf32>
    %52 = vector.broadcast %1 : f32 to vector<12x1xf32>
    %53 = arith.mulf %52, %38 : vector<12x1xf32>
    %cst_17 = arith.constant -0.99999988 : f32
    %cst_18 = arith.constant 0.99999988 : f32
    %54 = vector.broadcast %cst_17 : f32 to vector<12x1xf32>
    %55 = arith.maximumf %54, %53 : vector<12x1xf32>
    %56 = vector.broadcast %cst_18 : f32 to vector<12x1xf32>
    %57 = arith.minimumf %56, %55 : vector<12x1xf32>
    %58 = math.log1p %57 : vector<12x1xf32>
    %cst_19 = arith.constant 0.000000e+00 : f32
    %59 = vector.broadcast %cst_19 : f32 to vector<12x1xf32>
    %60 = arith.subf %59, %57 : vector<12x1xf32>
    %61 = math.log1p %60 : vector<12x1xf32>
    %62 = arith.subf %58, %61 : vector<12x1xf32>
    %cst_20 = arith.constant 5.000000e-01 : f32
    %63 = vector.broadcast %cst_20 : f32 to vector<12x1xf32>
    %64 = arith.mulf %63, %62 : vector<12x1xf32>
    %65 = arith.mulf %51, %64 : vector<12x1xf32>
    %cst_21 = arith.constant -1.500000e+01 : f32
    %cst_22 = arith.constant 1.500000e+01 : f32
    %66 = vector.broadcast %cst_21 : f32 to vector<12x1xf32>
    %67 = arith.maximumf %66, %65 : vector<12x1xf32>
    %68 = vector.broadcast %cst_22 : f32 to vector<12x1xf32>
    %69 = arith.minimumf %68, %67 : vector<12x1xf32>
    %70 = math.tanh %69 : vector<12x1xf32>
    %71 = vector.broadcast %1 : f32 to vector<12x1xf32>
    %72 = arith.mulf %71, %49 : vector<12x1xf32>
    %73 = tpu.reciprocal %72 {approx = true} : vector<12x1xf32> -> vector<12x1xf32>
    %74 = arith.mulf %70, %73 : vector<12x1xf32>
    %75 = vector.broadcast %74 : vector<12x1xf32> to vector<12x16xf32>
    %76 = arith.mulf %75, %41 : vector<12x16xf32>
    %cst_23 = arith.constant 0.000000e+00 : f32
    %77 = vector.shape_cast %46 : vector<12x1xi1> to vector<12x1xi1>
    %78 = vector.broadcast %77 : vector<12x1xi1> to vector<12x16xi1>
    %79 = vector.broadcast %cst_23 : f32 to vector<12x16xf32>
    %80 = arith.select %78, %79, %76 : vector<12x16xi1>, vector<12x16xf32>
    %81 = vector.broadcast %2 : f32 to vector<12x1xf32>
    %82 = arith.mulf %70, %81 : vector<12x1xf32>
    %cst_24 = arith.constant 0.000000e+00 : f32
    %83 = vector.broadcast %cst_24 : f32 to vector<12x1xf32>
    %84 = arith.select %46, %83, %82 : vector<12x1xi1>, vector<12x1xf32>
    %cst_25 = arith.constant 1.000000e-15 : f32
    %85 = vector.broadcast %cst_25 : f32 to vector<12x1xf32>
    %86 = arith.maximumf %84, %85 : vector<12x1xf32>
    %87 = vector.broadcast %3 : f32 to vector<12x1xf32>
    %88 = arith.cmpf ogt, %86, %87 : vector<12x1xf32>
    %89 = tpu.reciprocal %86 {approx = true} : vector<12x1xf32> -> vector<12x1xf32>
    %90 = vector.broadcast %3 : f32 to vector<12x1xf32>
    %91 = arith.mulf %90, %89 : vector<12x1xf32>
    %cst_26 = arith.constant 1.000000e+00 : f32
    %92 = vector.broadcast %cst_26 : f32 to vector<12x1xf32>
    %93 = arith.select %88, %91, %92 : vector<12x1xi1>, vector<12x1xf32>
    %94 = vector.broadcast %93 : vector<12x1xf32> to vector<12x16xf32>
    %95 = arith.mulf %80, %94 : vector<12x16xf32>
    %96 = vector.broadcast %3 : f32 to vector<12x1xf32>
    %97 = arith.select %88, %96, %86 : vector<12x1xi1>, vector<12x1xf32>
    %98 = arith.mulf %40, %40 : vector<1x16xf32>
    %cst_27 = arith.constant dense<0.000000e+00> : vector<1xf32>
    %99 = vector.multi_reduction <add>, %98, %cst_27 [1] : vector<1x16xf32> to vector<1xf32>
    %100 = vector.shape_cast %99 : vector<1xf32> to vector<1x1xf32>
    %101 = math.sqrt %100 : vector<1x1xf32>
    %cst_28 = arith.constant 1.000000e-15 : f32
    %102 = vector.broadcast %cst_28 : f32 to vector<1x1xf32>
    %103 = arith.maximumf %101, %102 : vector<1x1xf32>
    %104 = vector.broadcast %1 : f32 to vector<1x1xf32>
    %105 = arith.mulf %104, %103 : vector<1x1xf32>
    %cst_29 = arith.constant -1.500000e+01 : f32
    %cst_30 = arith.constant 1.500000e+01 : f32
    %106 = vector.broadcast %cst_29 : f32 to vector<1x1xf32>
    %107 = arith.maximumf %106, %105 : vector<1x1xf32>
    %108 = vector.broadcast %cst_30 : f32 to vector<1x1xf32>
    %109 = arith.minimumf %108, %107 : vector<1x1xf32>
    %110 = math.tanh %109 : vector<1x1xf32>
    %111 = vector.broadcast %1 : f32 to vector<1x1xf32>
    %112 = arith.mulf %111, %103 : vector<1x1xf32>
    %113 = tpu.reciprocal %112 {approx = true} : vector<1x1xf32> -> vector<1x1xf32>
    %114 = arith.mulf %110, %113 : vector<1x1xf32>
    %115 = vector.broadcast %114 : vector<1x1xf32> to vector<1x16xf32>
    %116 = arith.mulf %115, %40 : vector<1x16xf32>
    %117 = vector.broadcast %2 : f32 to vector<1x1xf32>
    %118 = arith.mulf %110, %117 : vector<1x1xf32>
    %cst_31 = arith.constant 1.000000e-15 : f32
    %119 = vector.broadcast %cst_31 : f32 to vector<1x1xf32>
    %120 = arith.maximumf %118, %119 : vector<1x1xf32>
    %121 = vector.broadcast %3 : f32 to vector<1x1xf32>
    %122 = arith.cmpf ogt, %120, %121 : vector<1x1xf32>
    %123 = tpu.reciprocal %120 {approx = true} : vector<1x1xf32> -> vector<1x1xf32>
    %124 = vector.broadcast %3 : f32 to vector<1x1xf32>
    %125 = arith.mulf %124, %123 : vector<1x1xf32>
    %cst_32 = arith.constant 1.000000e+00 : f32
    %126 = vector.broadcast %cst_32 : f32 to vector<1x1xf32>
    %127 = arith.select %122, %125, %126 : vector<1x1xi1>, vector<1x1xf32>
    %128 = vector.broadcast %127 : vector<1x1xf32> to vector<1x16xf32>
    %129 = arith.mulf %116, %128 : vector<1x16xf32>
    %130 = vector.broadcast %3 : f32 to vector<1x1xf32>
    %131 = arith.select %122, %130, %120 : vector<1x1xi1>, vector<1x1xf32>
    %132 = arith.mulf %97, %97 : vector<12x1xf32>
    %133 = arith.mulf %131, %131 : vector<1x1xf32>
    %134 = vector.broadcast %129 : vector<1x16xf32> to vector<12x16xf32>
    %135 = arith.mulf %95, %134 : vector<12x16xf32>
    %cst_33 = arith.constant dense<0.000000e+00> : vector<12xf32>
    %136 = vector.multi_reduction <add>, %135, %cst_33 [1] : vector<12x16xf32> to vector<12xf32>
    %137 = vector.shape_cast %136 : vector<12xf32> to vector<12x1xf32>
    %cst_34 = arith.constant 2.000000e+00 : f32
    %138 = arith.mulf %cst_34, %0 : f32
    %139 = vector.broadcast %138 : f32 to vector<12x1xf32>
    %140 = arith.mulf %139, %137 : vector<12x1xf32>
    %cst_35 = arith.constant 1.000000e+00 : f32
    %141 = vector.broadcast %cst_35 : f32 to vector<12x1xf32>
    %142 = arith.addf %141, %140 : vector<12x1xf32>
    %143 = vector.broadcast %0 : f32 to vector<1x1xf32>
    %144 = arith.mulf %143, %133 : vector<1x1xf32>
    %145 = vector.broadcast %144 : vector<1x1xf32> to vector<12x1xf32>
    %146 = arith.addf %142, %145 : vector<12x1xf32>
    %147 = vector.broadcast %0 : f32 to vector<12x1xf32>
    %148 = arith.mulf %147, %132 : vector<12x1xf32>
    %cst_36 = arith.constant 1.000000e+00 : f32
    %149 = vector.broadcast %cst_36 : f32 to vector<12x1xf32>
    %150 = arith.subf %149, %148 : vector<12x1xf32>
    %cst_37 = arith.constant 2.000000e+00 : f32
    %151 = arith.mulf %cst_37, %0 : f32
    %152 = vector.broadcast %151 : f32 to vector<12x1xf32>
    %153 = arith.mulf %152, %137 : vector<12x1xf32>
    %cst_38 = arith.constant 1.000000e+00 : f32
    %154 = vector.broadcast %cst_38 : f32 to vector<12x1xf32>
    %155 = arith.addf %154, %153 : vector<12x1xf32>
    %156 = arith.mulf %0, %0 : f32
    %157 = vector.broadcast %156 : f32 to vector<12x1xf32>
    %158 = arith.mulf %157, %132 : vector<12x1xf32>
    %159 = vector.broadcast %133 : vector<1x1xf32> to vector<12x1xf32>
    %160 = arith.mulf %158, %159 : vector<12x1xf32>
    %161 = arith.addf %155, %160 : vector<12x1xf32>
    %cst_39 = arith.constant 1.000000e-15 : f32
    %162 = vector.broadcast %cst_39 : f32 to vector<12x1xf32>
    %163 = arith.maximumf %161, %162 : vector<12x1xf32>
    %164 = tpu.reciprocal %163 {approx = true} : vector<12x1xf32> -> vector<12x1xf32>
    %165 = vector.broadcast %146 : vector<12x1xf32> to vector<12x16xf32>
    %166 = arith.mulf %165, %95 : vector<12x16xf32>
    %167 = vector.broadcast %150 : vector<12x1xf32> to vector<12x16xf32>
    %168 = vector.broadcast %129 : vector<1x16xf32> to vector<12x16xf32>
    %169 = arith.mulf %167, %168 : vector<12x16xf32>
    %170 = arith.addf %166, %169 : vector<12x16xf32>
    %171 = vector.broadcast %164 : vector<12x1xf32> to vector<12x16xf32>
    %172 = arith.mulf %170, %171 : vector<12x16xf32>
    %173 = arith.mulf %146, %146 : vector<12x1xf32>
    %174 = arith.mulf %173, %132 : vector<12x1xf32>
    %cst_40 = arith.constant 2.000000e+00 : f32
    %175 = vector.broadcast %cst_40 : f32 to vector<12x1xf32>
    %176 = arith.mulf %175, %146 : vector<12x1xf32>
    %177 = arith.mulf %176, %150 : vector<12x1xf32>
    %178 = arith.mulf %177, %137 : vector<12x1xf32>
    %179 = arith.addf %174, %178 : vector<12x1xf32>
    %180 = arith.mulf %150, %150 : vector<12x1xf32>
    %181 = vector.broadcast %133 : vector<1x1xf32> to vector<12x1xf32>
    %182 = arith.mulf %180, %181 : vector<12x1xf32>
    %183 = arith.addf %179, %182 : vector<12x1xf32>
    %cst_41 = arith.constant 0.000000e+00 : f32
    %184 = vector.broadcast %cst_41 : f32 to vector<12x1xf32>
    %185 = arith.maximumf %183, %184 : vector<12x1xf32>
    %186 = math.sqrt %185 : vector<12x1xf32>
    %187 = arith.mulf %186, %164 : vector<12x1xf32>
    %cst_42 = arith.constant 1.000000e-15 : f32
    %188 = vector.broadcast %cst_42 : f32 to vector<12x1xf32>
    %189 = arith.maximumf %187, %188 : vector<12x1xf32>
    %190 = vector.broadcast %3 : f32 to vector<12x1xf32>
    %191 = arith.cmpf ogt, %189, %190 : vector<12x1xf32>
    %192 = tpu.reciprocal %189 {approx = true} : vector<12x1xf32> -> vector<12x1xf32>
    %193 = vector.broadcast %3 : f32 to vector<12x1xf32>
    %194 = arith.mulf %193, %192 : vector<12x1xf32>
    %cst_43 = arith.constant 1.000000e+00 : f32
    %195 = vector.broadcast %cst_43 : f32 to vector<12x1xf32>
    %196 = arith.select %191, %194, %195 : vector<12x1xi1>, vector<12x1xf32>
    %197 = vector.broadcast %196 : vector<12x1xf32> to vector<12x16xf32>
    %198 = arith.mulf %172, %197 : vector<12x16xf32>
    %199 = vector.broadcast %3 : f32 to vector<12x1xf32>
    %200 = arith.select %191, %199, %189 : vector<12x1xi1>, vector<12x1xf32>
    %201 = vector.broadcast %1 : f32 to vector<12x1xf32>
    %202 = arith.mulf %201, %200 : vector<12x1xf32>
    %cst_44 = arith.constant -0.99999988 : f32
    %cst_45 = arith.constant 0.99999988 : f32
    %203 = vector.broadcast %cst_44 : f32 to vector<12x1xf32>
    %204 = arith.maximumf %203, %202 : vector<12x1xf32>
    %205 = vector.broadcast %cst_45 : f32 to vector<12x1xf32>
    %206 = arith.minimumf %205, %204 : vector<12x1xf32>
    %207 = math.log1p %206 : vector<12x1xf32>
    %cst_46 = arith.constant 0.000000e+00 : f32
    %208 = vector.broadcast %cst_46 : f32 to vector<12x1xf32>
    %209 = arith.subf %208, %206 : vector<12x1xf32>
    %210 = math.log1p %209 : vector<12x1xf32>
    %211 = arith.subf %207, %210 : vector<12x1xf32>
    %cst_47 = arith.constant 5.000000e-01 : f32
    %212 = vector.broadcast %cst_47 : f32 to vector<12x1xf32>
    %213 = arith.mulf %212, %211 : vector<12x1xf32>
    %214 = vector.broadcast %1 : f32 to vector<12x1xf32>
    %215 = arith.mulf %214, %200 : vector<12x1xf32>
    %216 = tpu.reciprocal %215 {approx = true} : vector<12x1xf32> -> vector<12x1xf32>
    %217 = arith.mulf %213, %216 : vector<12x1xf32>
    %218 = vector.broadcast %217 : vector<12x1xf32> to vector<12x16xf32>
    %219 = arith.mulf %218, %198 : vector<12x16xf32>
    %cst_48 = arith.constant 0.000000e+00 : f32
    %220 = vector.broadcast %cst_48 : f32 to vector<12x16xf32>
    %221 = arith.maximumf %219, %220 : vector<12x16xf32>
    %222 = arith.mulf %221, %221 : vector<12x16xf32>
    %cst_49 = arith.constant dense<0.000000e+00> : vector<12xf32>
    %223 = vector.multi_reduction <add>, %222, %cst_49 [1] : vector<12x16xf32> to vector<12xf32>
    %224 = vector.shape_cast %223 : vector<12xf32> to vector<12x1xf32>
    %225 = math.sqrt %224 : vector<12x1xf32>
    %cst_50 = arith.constant 1.000000e-15 : f32
    %226 = vector.broadcast %cst_50 : f32 to vector<12x1xf32>
    %227 = arith.maximumf %225, %226 : vector<12x1xf32>
    %228 = vector.broadcast %1 : f32 to vector<12x1xf32>
    %229 = arith.mulf %228, %227 : vector<12x1xf32>
    %cst_51 = arith.constant -1.500000e+01 : f32
    %cst_52 = arith.constant 1.500000e+01 : f32
    %230 = vector.broadcast %cst_51 : f32 to vector<12x1xf32>
    %231 = arith.maximumf %230, %229 : vector<12x1xf32>
    %232 = vector.broadcast %cst_52 : f32 to vector<12x1xf32>
    %233 = arith.minimumf %232, %231 : vector<12x1xf32>
    %234 = math.tanh %233 : vector<12x1xf32>
    %235 = vector.broadcast %1 : f32 to vector<12x1xf32>
    %236 = arith.mulf %235, %227 : vector<12x1xf32>
    %237 = tpu.reciprocal %236 {approx = true} : vector<12x1xf32> -> vector<12x1xf32>
    %238 = arith.mulf %234, %237 : vector<12x1xf32>
    %239 = vector.broadcast %238 : vector<12x1xf32> to vector<12x16xf32>
    %240 = arith.mulf %239, %221 : vector<12x16xf32>
    %241 = vector.broadcast %2 : f32 to vector<12x1xf32>
    %242 = arith.mulf %234, %241 : vector<12x1xf32>
    %cst_53 = arith.constant 1.000000e-15 : f32
    %243 = vector.broadcast %cst_53 : f32 to vector<12x1xf32>
    %244 = arith.maximumf %242, %243 : vector<12x1xf32>
    %245 = vector.broadcast %3 : f32 to vector<12x1xf32>
    %246 = arith.cmpf ogt, %244, %245 : vector<12x1xf32>
    %247 = tpu.reciprocal %244 {approx = true} : vector<12x1xf32> -> vector<12x1xf32>
    %248 = vector.broadcast %3 : f32 to vector<12x1xf32>
    %249 = arith.mulf %248, %247 : vector<12x1xf32>
    %cst_54 = arith.constant 1.000000e+00 : f32
    %250 = vector.broadcast %cst_54 : f32 to vector<12x1xf32>
    %251 = arith.select %246, %249, %250 : vector<12x1xi1>, vector<12x1xf32>
    %252 = vector.broadcast %251 : vector<12x1xf32> to vector<12x16xf32>
    %253 = arith.mulf %240, %252 : vector<12x16xf32>
    %254 = vector.broadcast %3 : f32 to vector<12x1xf32>
    %255 = arith.select %246, %254, %244 : vector<12x1xi1>, vector<12x1xf32>
    %c0_55 = arith.constant 0 : index
    %c0_56 = arith.constant 0 : index
    %256 = vector.load %arg5[%c0_55, %c0_56] : memref<16x8xf32, #tpu.memory_space<vmem>>, vector<16x8xf32>
    %c0_57 = arith.constant 0 : index
    %c0_58 = arith.constant 0 : index
    %257 = vector.load %arg6[%c0_57, %c0_58] : memref<1x8xf32, #tpu.memory_space<vmem>>, vector<1x8xf32>
    %cst_59 = arith.constant dense<0.000000e+00> : vector<12x8xf32>
    %258 = tpu.matmul %253, %256, %cst_59 {dimension_numbers = #tpu.dot_dimension_numbers<[1], [0], [0], [1], [0, 0, 1, 1], [], []>} : vector<12x16xf32>, vector<16x8xf32>, vector<12x8xf32> -> vector<12x8xf32>
    %259 = arith.mulf %258, %258 : vector<12x8xf32>
    %cst_60 = arith.constant dense<0.000000e+00> : vector<12xf32>
    %260 = vector.multi_reduction <add>, %259, %cst_60 [1] : vector<12x8xf32> to vector<12xf32>
    %261 = vector.shape_cast %260 : vector<12xf32> to vector<12x1xf32>
    %cst_61 = arith.constant 0.000000e+00 : f32
    %262 = vector.broadcast %cst_61 : f32 to vector<12x1xf32>
    %263 = arith.cmpf ole, %261, %262 : vector<12x1xf32>
    %264 = math.sqrt %261 : vector<12x1xf32>
    %cst_62 = arith.constant 1.000000e-15 : f32
    %265 = vector.broadcast %cst_62 : f32 to vector<12x1xf32>
    %266 = arith.maximumf %264, %265 : vector<12x1xf32>
    %267 = tpu.reciprocal %255 {approx = true} : vector<12x1xf32> -> vector<12x1xf32>
    %268 = arith.mulf %266, %267 : vector<12x1xf32>
    %269 = vector.broadcast %1 : f32 to vector<12x1xf32>
    %270 = arith.mulf %269, %255 : vector<12x1xf32>
    %cst_63 = arith.constant -0.99999988 : f32
    %cst_64 = arith.constant 0.99999988 : f32
    %271 = vector.broadcast %cst_63 : f32 to vector<12x1xf32>
    %272 = arith.maximumf %271, %270 : vector<12x1xf32>
    %273 = vector.broadcast %cst_64 : f32 to vector<12x1xf32>
    %274 = arith.minimumf %273, %272 : vector<12x1xf32>
    %275 = math.log1p %274 : vector<12x1xf32>
    %cst_65 = arith.constant 0.000000e+00 : f32
    %276 = vector.broadcast %cst_65 : f32 to vector<12x1xf32>
    %277 = arith.subf %276, %274 : vector<12x1xf32>
    %278 = math.log1p %277 : vector<12x1xf32>
    %279 = arith.subf %275, %278 : vector<12x1xf32>
    %cst_66 = arith.constant 5.000000e-01 : f32
    %280 = vector.broadcast %cst_66 : f32 to vector<12x1xf32>
    %281 = arith.mulf %280, %279 : vector<12x1xf32>
    %282 = arith.mulf %268, %281 : vector<12x1xf32>
    %cst_67 = arith.constant -1.500000e+01 : f32
    %cst_68 = arith.constant 1.500000e+01 : f32
    %283 = vector.broadcast %cst_67 : f32 to vector<12x1xf32>
    %284 = arith.maximumf %283, %282 : vector<12x1xf32>
    %285 = vector.broadcast %cst_68 : f32 to vector<12x1xf32>
    %286 = arith.minimumf %285, %284 : vector<12x1xf32>
    %287 = math.tanh %286 : vector<12x1xf32>
    %288 = vector.broadcast %1 : f32 to vector<12x1xf32>
    %289 = arith.mulf %288, %266 : vector<12x1xf32>
    %290 = tpu.reciprocal %289 {approx = true} : vector<12x1xf32> -> vector<12x1xf32>
    %291 = arith.mulf %287, %290 : vector<12x1xf32>
    %292 = vector.broadcast %291 : vector<12x1xf32> to vector<12x8xf32>
    %293 = arith.mulf %292, %258 : vector<12x8xf32>
    %cst_69 = arith.constant 0.000000e+00 : f32
    %294 = vector.shape_cast %263 : vector<12x1xi1> to vector<12x1xi1>
    %295 = vector.broadcast %294 : vector<12x1xi1> to vector<12x8xi1>
    %296 = vector.broadcast %cst_69 : f32 to vector<12x8xf32>
    %297 = arith.select %295, %296, %293 : vector<12x8xi1>, vector<12x8xf32>
    %298 = vector.broadcast %2 : f32 to vector<12x1xf32>
    %299 = arith.mulf %287, %298 : vector<12x1xf32>
    %cst_70 = arith.constant 0.000000e+00 : f32
    %300 = vector.broadcast %cst_70 : f32 to vector<12x1xf32>
    %301 = arith.select %263, %300, %299 : vector<12x1xi1>, vector<12x1xf32>
    %cst_71 = arith.constant 1.000000e-15 : f32
    %302 = vector.broadcast %cst_71 : f32 to vector<12x1xf32>
    %303 = arith.maximumf %301, %302 : vector<12x1xf32>
    %304 = vector.broadcast %3 : f32 to vector<12x1xf32>
    %305 = arith.cmpf ogt, %303, %304 : vector<12x1xf32>
    %306 = tpu.reciprocal %303 {approx = true} : vector<12x1xf32> -> vector<12x1xf32>
    %307 = vector.broadcast %3 : f32 to vector<12x1xf32>
    %308 = arith.mulf %307, %306 : vector<12x1xf32>
    %cst_72 = arith.constant 1.000000e+00 : f32
    %309 = vector.broadcast %cst_72 : f32 to vector<12x1xf32>
    %310 = arith.select %305, %308, %309 : vector<12x1xi1>, vector<12x1xf32>
    %311 = vector.broadcast %310 : vector<12x1xf32> to vector<12x8xf32>
    %312 = arith.mulf %297, %311 : vector<12x8xf32>
    %313 = vector.broadcast %3 : f32 to vector<12x1xf32>
    %314 = arith.select %305, %313, %303 : vector<12x1xi1>, vector<12x1xf32>
    %315 = arith.mulf %257, %257 : vector<1x8xf32>
    %cst_73 = arith.constant dense<0.000000e+00> : vector<1xf32>
    %316 = vector.multi_reduction <add>, %315, %cst_73 [1] : vector<1x8xf32> to vector<1xf32>
    %317 = vector.shape_cast %316 : vector<1xf32> to vector<1x1xf32>
    %318 = math.sqrt %317 : vector<1x1xf32>
    %cst_74 = arith.constant 1.000000e-15 : f32
    %319 = vector.broadcast %cst_74 : f32 to vector<1x1xf32>
    %320 = arith.maximumf %318, %319 : vector<1x1xf32>
    %321 = vector.broadcast %1 : f32 to vector<1x1xf32>
    %322 = arith.mulf %321, %320 : vector<1x1xf32>
    %cst_75 = arith.constant -1.500000e+01 : f32
    %cst_76 = arith.constant 1.500000e+01 : f32
    %323 = vector.broadcast %cst_75 : f32 to vector<1x1xf32>
    %324 = arith.maximumf %323, %322 : vector<1x1xf32>
    %325 = vector.broadcast %cst_76 : f32 to vector<1x1xf32>
    %326 = arith.minimumf %325, %324 : vector<1x1xf32>
    %327 = math.tanh %326 : vector<1x1xf32>
    %328 = vector.broadcast %1 : f32 to vector<1x1xf32>
    %329 = arith.mulf %328, %320 : vector<1x1xf32>
    %330 = tpu.reciprocal %329 {approx = true} : vector<1x1xf32> -> vector<1x1xf32>
    %331 = arith.mulf %327, %330 : vector<1x1xf32>
    %332 = vector.broadcast %331 : vector<1x1xf32> to vector<1x8xf32>
    %333 = arith.mulf %332, %257 : vector<1x8xf32>
    %334 = vector.broadcast %2 : f32 to vector<1x1xf32>
    %335 = arith.mulf %327, %334 : vector<1x1xf32>
    %cst_77 = arith.constant 1.000000e-15 : f32
    %336 = vector.broadcast %cst_77 : f32 to vector<1x1xf32>
    %337 = arith.maximumf %335, %336 : vector<1x1xf32>
    %338 = vector.broadcast %3 : f32 to vector<1x1xf32>
    %339 = arith.cmpf ogt, %337, %338 : vector<1x1xf32>
    %340 = tpu.reciprocal %337 {approx = true} : vector<1x1xf32> -> vector<1x1xf32>
    %341 = vector.broadcast %3 : f32 to vector<1x1xf32>
    %342 = arith.mulf %341, %340 : vector<1x1xf32>
    %cst_78 = arith.constant 1.000000e+00 : f32
    %343 = vector.broadcast %cst_78 : f32 to vector<1x1xf32>
    %344 = arith.select %339, %342, %343 : vector<1x1xi1>, vector<1x1xf32>
    %345 = vector.broadcast %344 : vector<1x1xf32> to vector<1x8xf32>
    %346 = arith.mulf %333, %345 : vector<1x8xf32>
    %347 = vector.broadcast %3 : f32 to vector<1x1xf32>
    %348 = arith.select %339, %347, %337 : vector<1x1xi1>, vector<1x1xf32>
    %349 = arith.mulf %314, %314 : vector<12x1xf32>
    %350 = arith.mulf %348, %348 : vector<1x1xf32>
    %351 = vector.broadcast %346 : vector<1x8xf32> to vector<12x8xf32>
    %352 = arith.mulf %312, %351 : vector<12x8xf32>
    %cst_79 = arith.constant dense<0.000000e+00> : vector<12xf32>
    %353 = vector.multi_reduction <add>, %352, %cst_79 [1] : vector<12x8xf32> to vector<12xf32>
    %354 = vector.shape_cast %353 : vector<12xf32> to vector<12x1xf32>
    %cst_80 = arith.constant 2.000000e+00 : f32
    %355 = arith.mulf %cst_80, %0 : f32
    %356 = vector.broadcast %355 : f32 to vector<12x1xf32>
    %357 = arith.mulf %356, %354 : vector<12x1xf32>
    %cst_81 = arith.constant 1.000000e+00 : f32
    %358 = vector.broadcast %cst_81 : f32 to vector<12x1xf32>
    %359 = arith.addf %358, %357 : vector<12x1xf32>
    %360 = vector.broadcast %0 : f32 to vector<1x1xf32>
    %361 = arith.mulf %360, %350 : vector<1x1xf32>
    %362 = vector.broadcast %361 : vector<1x1xf32> to vector<12x1xf32>
    %363 = arith.addf %359, %362 : vector<12x1xf32>
    %364 = vector.broadcast %0 : f32 to vector<12x1xf32>
    %365 = arith.mulf %364, %349 : vector<12x1xf32>
    %cst_82 = arith.constant 1.000000e+00 : f32
    %366 = vector.broadcast %cst_82 : f32 to vector<12x1xf32>
    %367 = arith.subf %366, %365 : vector<12x1xf32>
    %cst_83 = arith.constant 2.000000e+00 : f32
    %368 = arith.mulf %cst_83, %0 : f32
    %369 = vector.broadcast %368 : f32 to vector<12x1xf32>
    %370 = arith.mulf %369, %354 : vector<12x1xf32>
    %cst_84 = arith.constant 1.000000e+00 : f32
    %371 = vector.broadcast %cst_84 : f32 to vector<12x1xf32>
    %372 = arith.addf %371, %370 : vector<12x1xf32>
    %373 = arith.mulf %0, %0 : f32
    %374 = vector.broadcast %373 : f32 to vector<12x1xf32>
    %375 = arith.mulf %374, %349 : vector<12x1xf32>
    %376 = vector.broadcast %350 : vector<1x1xf32> to vector<12x1xf32>
    %377 = arith.mulf %375, %376 : vector<12x1xf32>
    %378 = arith.addf %372, %377 : vector<12x1xf32>
    %cst_85 = arith.constant 1.000000e-15 : f32
    %379 = vector.broadcast %cst_85 : f32 to vector<12x1xf32>
    %380 = arith.maximumf %378, %379 : vector<12x1xf32>
    %381 = tpu.reciprocal %380 {approx = true} : vector<12x1xf32> -> vector<12x1xf32>
    %382 = vector.broadcast %363 : vector<12x1xf32> to vector<12x8xf32>
    %383 = arith.mulf %382, %312 : vector<12x8xf32>
    %384 = vector.broadcast %367 : vector<12x1xf32> to vector<12x8xf32>
    %385 = vector.broadcast %346 : vector<1x8xf32> to vector<12x8xf32>
    %386 = arith.mulf %384, %385 : vector<12x8xf32>
    %387 = arith.addf %383, %386 : vector<12x8xf32>
    %388 = vector.broadcast %381 : vector<12x1xf32> to vector<12x8xf32>
    %389 = arith.mulf %387, %388 : vector<12x8xf32>
    %390 = arith.mulf %363, %363 : vector<12x1xf32>
    %391 = arith.mulf %390, %349 : vector<12x1xf32>
    %cst_86 = arith.constant 2.000000e+00 : f32
    %392 = vector.broadcast %cst_86 : f32 to vector<12x1xf32>
    %393 = arith.mulf %392, %363 : vector<12x1xf32>
    %394 = arith.mulf %393, %367 : vector<12x1xf32>
    %395 = arith.mulf %394, %354 : vector<12x1xf32>
    %396 = arith.addf %391, %395 : vector<12x1xf32>
    %397 = arith.mulf %367, %367 : vector<12x1xf32>
    %398 = vector.broadcast %350 : vector<1x1xf32> to vector<12x1xf32>
    %399 = arith.mulf %397, %398 : vector<12x1xf32>
    %400 = arith.addf %396, %399 : vector<12x1xf32>
    %cst_87 = arith.constant 0.000000e+00 : f32
    %401 = vector.broadcast %cst_87 : f32 to vector<12x1xf32>
    %402 = arith.maximumf %400, %401 : vector<12x1xf32>
    %403 = math.sqrt %402 : vector<12x1xf32>
    %404 = arith.mulf %403, %381 : vector<12x1xf32>
    %cst_88 = arith.constant 1.000000e-15 : f32
    %405 = vector.broadcast %cst_88 : f32 to vector<12x1xf32>
    %406 = arith.maximumf %404, %405 : vector<12x1xf32>
    %407 = vector.broadcast %3 : f32 to vector<12x1xf32>
    %408 = arith.cmpf ogt, %406, %407 : vector<12x1xf32>
    %409 = tpu.reciprocal %406 {approx = true} : vector<12x1xf32> -> vector<12x1xf32>
    %410 = vector.broadcast %3 : f32 to vector<12x1xf32>
    %411 = arith.mulf %410, %409 : vector<12x1xf32>
    %cst_89 = arith.constant 1.000000e+00 : f32
    %412 = vector.broadcast %cst_89 : f32 to vector<12x1xf32>
    %413 = arith.select %408, %411, %412 : vector<12x1xi1>, vector<12x1xf32>
    %414 = vector.broadcast %413 : vector<12x1xf32> to vector<12x8xf32>
    %415 = arith.mulf %389, %414 : vector<12x8xf32>
    %416 = vector.broadcast %3 : f32 to vector<12x1xf32>
    %417 = arith.select %408, %416, %406 : vector<12x1xi1>, vector<12x1xf32>
    %418 = vector.broadcast %1 : f32 to vector<12x1xf32>
    %419 = arith.mulf %418, %417 : vector<12x1xf32>
    %cst_90 = arith.constant -0.99999988 : f32
    %cst_91 = arith.constant 0.99999988 : f32
    %420 = vector.broadcast %cst_90 : f32 to vector<12x1xf32>
    %421 = arith.maximumf %420, %419 : vector<12x1xf32>
    %422 = vector.broadcast %cst_91 : f32 to vector<12x1xf32>
    %423 = arith.minimumf %422, %421 : vector<12x1xf32>
    %424 = math.log1p %423 : vector<12x1xf32>
    %cst_92 = arith.constant 0.000000e+00 : f32
    %425 = vector.broadcast %cst_92 : f32 to vector<12x1xf32>
    %426 = arith.subf %425, %423 : vector<12x1xf32>
    %427 = math.log1p %426 : vector<12x1xf32>
    %428 = arith.subf %424, %427 : vector<12x1xf32>
    %cst_93 = arith.constant 5.000000e-01 : f32
    %429 = vector.broadcast %cst_93 : f32 to vector<12x1xf32>
    %430 = arith.mulf %429, %428 : vector<12x1xf32>
    %431 = vector.broadcast %1 : f32 to vector<12x1xf32>
    %432 = arith.mulf %431, %417 : vector<12x1xf32>
    %433 = tpu.reciprocal %432 {approx = true} : vector<12x1xf32> -> vector<12x1xf32>
    %434 = arith.mulf %430, %433 : vector<12x1xf32>
    %435 = vector.broadcast %434 : vector<12x1xf32> to vector<12x8xf32>
    %436 = arith.mulf %435, %415 : vector<12x8xf32>
    %cst_94 = arith.constant 0.000000e+00 : f32
    %437 = vector.broadcast %cst_94 : f32 to vector<12x8xf32>
    %438 = arith.maximumf %436, %437 : vector<12x8xf32>
    %439 = arith.mulf %438, %438 : vector<12x8xf32>
    %cst_95 = arith.constant dense<0.000000e+00> : vector<12xf32>
    %440 = vector.multi_reduction <add>, %439, %cst_95 [1] : vector<12x8xf32> to vector<12xf32>
    %441 = vector.shape_cast %440 : vector<12xf32> to vector<12x1xf32>
    %442 = math.sqrt %441 : vector<12x1xf32>
    %cst_96 = arith.constant 1.000000e-15 : f32
    %443 = vector.broadcast %cst_96 : f32 to vector<12x1xf32>
    %444 = arith.maximumf %442, %443 : vector<12x1xf32>
    %445 = vector.broadcast %1 : f32 to vector<12x1xf32>
    %446 = arith.mulf %445, %444 : vector<12x1xf32>
    %cst_97 = arith.constant -1.500000e+01 : f32
    %cst_98 = arith.constant 1.500000e+01 : f32
    %447 = vector.broadcast %cst_97 : f32 to vector<12x1xf32>
    %448 = arith.maximumf %447, %446 : vector<12x1xf32>
    %449 = vector.broadcast %cst_98 : f32 to vector<12x1xf32>
    %450 = arith.minimumf %449, %448 : vector<12x1xf32>
    %451 = math.tanh %450 : vector<12x1xf32>
    %452 = vector.broadcast %1 : f32 to vector<12x1xf32>
    %453 = arith.mulf %452, %444 : vector<12x1xf32>
    %454 = tpu.reciprocal %453 {approx = true} : vector<12x1xf32> -> vector<12x1xf32>
    %455 = arith.mulf %451, %454 : vector<12x1xf32>
    %456 = vector.broadcast %455 : vector<12x1xf32> to vector<12x8xf32>
    %457 = arith.mulf %456, %438 : vector<12x8xf32>
    %458 = vector.broadcast %2 : f32 to vector<12x1xf32>
    %459 = arith.mulf %451, %458 : vector<12x1xf32>
    %cst_99 = arith.constant 1.000000e-15 : f32
    %460 = vector.broadcast %cst_99 : f32 to vector<12x1xf32>
    %461 = arith.maximumf %459, %460 : vector<12x1xf32>
    %462 = vector.broadcast %3 : f32 to vector<12x1xf32>
    %463 = arith.cmpf ogt, %461, %462 : vector<12x1xf32>
    %464 = tpu.reciprocal %461 {approx = true} : vector<12x1xf32> -> vector<12x1xf32>
    %465 = vector.broadcast %3 : f32 to vector<12x1xf32>
    %466 = arith.mulf %465, %464 : vector<12x1xf32>
    %cst_100 = arith.constant 1.000000e+00 : f32
    %467 = vector.broadcast %cst_100 : f32 to vector<12x1xf32>
    %468 = arith.select %463, %466, %467 : vector<12x1xi1>, vector<12x1xf32>
    %469 = vector.broadcast %468 : vector<12x1xf32> to vector<12x8xf32>
    %470 = arith.mulf %457, %469 : vector<12x8xf32>
    %471 = vector.broadcast %3 : f32 to vector<12x1xf32>
    %472 = arith.select %463, %471, %461 : vector<12x1xi1>, vector<12x1xf32>
    %473 = vector.broadcast %1 : f32 to vector<12x1xf32>
    %474 = arith.mulf %473, %472 : vector<12x1xf32>
    %cst_101 = arith.constant -0.99999988 : f32
    %cst_102 = arith.constant 0.99999988 : f32
    %475 = vector.broadcast %cst_101 : f32 to vector<12x1xf32>
    %476 = arith.maximumf %475, %474 : vector<12x1xf32>
    %477 = vector.broadcast %cst_102 : f32 to vector<12x1xf32>
    %478 = arith.minimumf %477, %476 : vector<12x1xf32>
    %479 = math.log1p %478 : vector<12x1xf32>
    %cst_103 = arith.constant 0.000000e+00 : f32
    %480 = vector.broadcast %cst_103 : f32 to vector<12x1xf32>
    %481 = arith.subf %480, %478 : vector<12x1xf32>
    %482 = math.log1p %481 : vector<12x1xf32>
    %483 = arith.subf %479, %482 : vector<12x1xf32>
    %cst_104 = arith.constant 5.000000e-01 : f32
    %484 = vector.broadcast %cst_104 : f32 to vector<12x1xf32>
    %485 = arith.mulf %484, %483 : vector<12x1xf32>
    %486 = vector.broadcast %1 : f32 to vector<12x1xf32>
    %487 = arith.mulf %486, %472 : vector<12x1xf32>
    %488 = tpu.reciprocal %487 {approx = true} : vector<12x1xf32> -> vector<12x1xf32>
    %489 = arith.mulf %485, %488 : vector<12x1xf32>
    %490 = vector.broadcast %489 : vector<12x1xf32> to vector<12x8xf32>
    %491 = arith.mulf %490, %470 : vector<12x8xf32>
    %c0_105 = arith.constant 0 : index
    %c0_106 = arith.constant 0 : index
    %492 = vector.load %arg9[%c0_105, %c0_106] : memref<1x8xf32, #tpu.memory_space<vmem>>, vector<1x8xf32>
    %c0_107 = arith.constant 0 : index
    %c0_108 = arith.constant 0 : index
    %493 = vector.load %arg7[%c0_107, %c0_108] : memref<2x8xf32, #tpu.memory_space<vmem>>, vector<2x8xf32>
    %cst_109 = arith.constant dense<0.000000e+00> : vector<1x2xf32>
    %494 = tpu.matmul %492, %493, %cst_109 {dimension_numbers = #tpu.dot_dimension_numbers<[1], [1], [0], [0], [0, 0, 1, 0], [], []>} : vector<1x8xf32>, vector<2x8xf32>, vector<1x2xf32> -> vector<1x2xf32>
    %c0_110 = arith.constant 0 : index
    %c0_111 = arith.constant 0 : index
    %495 = vector.load %arg10[%c0_110, %c0_111] : memref<1x8xf32, #tpu.memory_space<vmem>>, vector<1x8xf32>
    %cst_112 = arith.constant dense<0.000000e+00> : vector<1x12xf32>
    %496 = tpu.matmul %495, %491, %cst_112 {dimension_numbers = #tpu.dot_dimension_numbers<[1], [1], [0], [0], [0, 0, 1, 0], [], []>} : vector<1x8xf32>, vector<12x8xf32>, vector<1x12xf32> -> vector<1x12xf32>
    %c0_113 = arith.constant 0 : index
    %c0_114 = arith.constant 0 : index
    %497 = vector.load %arg8[%c0_113, %c0_114] : memref<2x12xf32, #tpu.memory_space<vmem>>, vector<2x12xf32>
    %cst_115 = arith.constant dense<0.000000e+00> : vector<1x2xf32>
    %498 = tpu.matmul %496, %497, %cst_115 {dimension_numbers = #tpu.dot_dimension_numbers<[1], [1], [0], [0], [0, 0, 1, 0], [], []>} : vector<1x12xf32>, vector<2x12xf32>, vector<1x2xf32> -> vector<1x2xf32>
    %499 = arith.addf %494, %498 : vector<1x2xf32>
    %c0_116 = arith.constant 0 : index
    %500 = memref.load %arg1[%c0_116] : memref<1xf32, #tpu.memory_space<smem>>
    %501 = vector.broadcast %500 : f32 to vector<1x2xf32>
    %502 = arith.addf %499, %501 : vector<1x2xf32>
    %cst_117 = arith.constant 0.000000e+00 : f32
    %503 = vector.broadcast %cst_117 : f32 to vector<1x2xf32>
    %504 = arith.subf %503, %502 : vector<1x2xf32>
    %505 = math.exp %504 : vector<1x2xf32>
    %cst_118 = arith.constant 1.000000e+00 : f32
    %506 = vector.broadcast %cst_118 : f32 to vector<1x2xf32>
    %507 = arith.addf %506, %505 : vector<1x2xf32>
    %cst_119 = arith.constant 1.000000e+00 : f32
    %508 = vector.broadcast %cst_119 : f32 to vector<1x2xf32>
    %509 = arith.divf %508, %507 : vector<1x2xf32>
    %c0_120 = arith.constant 0 : index
    %c0_121 = arith.constant 0 : index
    %510 = vector.load %arg11[%c0_120, %c0_121] : memref<1x2xf32, #tpu.memory_space<vmem>>, vector<1x2xf32>
    tpu.vector_store %arg11[%c0_120, %c0_121], %509 {strides = array<i32>} : memref<1x2xf32, #tpu.memory_space<vmem>>, vector<1x2xf32>,
    return
  }
}

</mosaic_0001>

<bundles_post_ra>
// kernel: tpu_custom_call.1
= control target key start
LH: loop header
LB: loop body
LE: loop exit
PB: predicated region body
PF: predicated region fallthrough
CT: control target
= control target key end

     0   :  { %18 = vsyncpa [#allocation5], 0  ;;  %s2187_s0 = inlined_call_operand.<no memory space> [shape: f32[1], index: 0, kind: input, shape index: {}]   ;;  %s2188_s1 = inlined_call_operand.<no memory space> [shape: f32[1], index: 1, kind: input, shape index: {}]   ;;  %s2189_s2 = inlined_call_operand.vmem [shape: f32[12,16], index: 2, kind: input, shape index: {}]   ;;  %s2190_s3 = inlined_call_operand.vmem [shape: f32[16,16], index: 3, kind: input, shape index: {}]   ;;  %s2191_s4 = inlined_call_operand.hbm [shape: f32[1,16], index: 4, kind: input, shape index: {}]   ;;  %s2192_s5 = inlined_call_operand.vmem [shape: f32[16,8], index: 5, kind: input, shape index: {}]   ;;  %s2193_s6 = inlined_call_operand.vmem [shape: f32[1,8], index: 6, kind: input, shape index: {}]   ;;  %s2194_s7 = inlined_call_operand.vmem [shape: f32[2,8], index: 7, kind: input, shape index: {}]   ;;  %s2195_s8 = inlined_call_operand.vmem [shape: f32[2,12], index: 8, kind: input, shape index: {}]   ;;  %s2196_s9 = inlined_call_operand.vmem [shape: f32[1,8], index: 9, kind: input, shape index: {}]   ;;  %s2197_s10 = inlined_call_operand.vmem [shape: f32[1,8], index: 10, kind: input, shape index: {}]   ;;  %s2198_s11 = inlined_call_operand.hbm [shape: f32[1,2], index: 11, kind: output, shape index: {}]  }
   0x1   :  { %19 = vsyncpa [#allocation6], 0  ;;  %s1671_s17 = smov [#allocation4]   ;;  %s1623_s21 = scalar_lea.hbm %s2191_s4, 16 }
   0x2   :  { %s34_s18 = sshll.u32 %s1671_s17, 4  ;;  %p1624_p0 = scmp.ne.s32.totalorder %s2191_s4, %s1623_s21  ;;  %s35_s18 = int_to_ptr.vmem [resolvable:$true] %s34_s18 }
   0x3   :  { %p1627_p1 = scmp.lt.u32.totalorder %s1623_s21, %s2191_s4 }
   0x5   :  { %p1629_p2 = pnand %p1627_p1, %p1624_p0 }
   0x7   :  { %1632 = shalt.err (!%p1629_p2)
}
   0x8   :  { %s1633_s26 = scalar_lea.vmem %s35_s18, 16  ;;  %s1637_s27 = scalar_lea.vmem %s35_s18, 32 }
   0x9   :  { %p1634_p3 = scmp.ne.s32.totalorder %s35_s18, %s1633_s26  ;;  %p1638_p4 = scmp.lt.s32.totalorder %s35_s18, %s35_s18 }
   0xa   :  { %p1639_p5 = scmp.lt.s32.totalorder %s1637_s27, %s1633_s26 }
   0xc   :  { %p1640_p6 = por %p1639_p5, %p1638_p4 }
   0xe   :  { %p1641_p7 = pnand %p1640_p6, %p1634_p3 }
  0x10   :  { %1644 = shalt.err (!%p1641_p7)
}
  0x11   :  { %37 = dma.hbm_to_vmem [thread:$0]  %s2191_s4, 16, %s35_s18, [#allocation5]  }
  0x12   :  { %1667 = dma.done.wait [#allocation5], 16  }
  0x13   :  { %1668 = vsyncadd [#allocation5], 4294967280  ;;  %v1751_v0 = vstv %s2187_s0  ;;  %v1757_v1 = vld [vmem:[%s2189_s2] sm:$0xff]  ;;  %vm71_vm0 = vcmask 130048   ;;  %v1762_v2 = vld [vmem:[%s2189_s2 + $0x8] sm:$0xf]  ;;  %s391_s23 = smul.f32 %s2187_s0, %s2187_s0 }
  0x14   :  { %1435 = vrsqrt.f32 %v1751_v0  ;;  %v69_v3 = vmul.f32 %v1757_v1, %v1757_v1  ;;  %v70_v4 = vmul.f32 %v1762_v2, %v1762_v2  ;;  %vm75_vm1 = vcmask 125952   ;;  %v1768_v5 = vld [vmem:[#allocation4] sm:$0x1]  ;;  %v129_v16 = vld [vmem:[%s2190_s3 + $0x8] sm:$0xff]  ;;  %s373_s26 = smul.f32 2.0, %s2187_s0  ;;  %s1675_s4 = smov [#allocation7]  }
  0x15   :  { %vm57_vm2 = vcmp.eq.f32.partialorder %v1751_v0, inf  ;;  %v60_v8 = vand.u32 2147483648, %v1751_v0  ;;  %v330_v10 = vmul.f32 %v1768_v5, %v1768_v5  ;;  %vm59_vm3 = vcmp.eq.f32.partialorder %v1751_v0, 0.0  ;;  %v128_v15 = vld [vmem:[%s2190_s3] sm:$0xff] }
  0x16   :  { %v72_v6 = vsel %vm71_vm0, %v69_v3, 0.0  ;;  %v76_v9 = vsel %vm75_vm1, %v70_v4, 0.0  ;;  %vm331_vm4 = vcmask 122880   ;;  %v1414_v17 = vpack.c.bf16 %v129_v16, %v128_v15 }
  0x17   :  { %73 = vadd.xlane.f32.xlu0 %v72_v6  ;;  %v332_v14 = vsel %vm331_vm4, %v330_v10, 0.0 }
  0x18   :  { %1415 = vmatprep.subr.bf16.mxu0 %v1414_v17 }
  0x19   :  { %1417 = vmatpush3.bf16.msra.mxu0 %v1414_v17 }
  0x1b   :  { %77 = vadd.xlane.f32.xlu0 %v76_v9 }
  0x1e   :  { %v1436_v7 = vpop.eup %1435 }
  0x1f   :  { %v56_v11 = vmul.f32 %v1436_v7, %v1751_v0  ;;  %333 = vadd.xlane.f32.xlu0 %v332_v14 }
  0x21   :  { %v58_v12 = vsel %vm57_vm2, %v1751_v0, %v56_v11 }
  0x22   :  { %v61_v13 = vsel %vm59_vm3, %v60_v8, %v58_v12 }
  0x23   :  { %1426 = vpush %v61_v13 }
  0x54   :  { %s1427_s19 = spop %1426 }
  0x55   :  { %v1785_v18 = vstv %s1427_s19 }
  0x56   :  { %1437 = vrcp.f32 %v1785_v18 }
  0x60   :  { %v1438_v19 = vpop.eup %1437 }
  0x61   :  { %1428 = vpush %v1438_v19 }
  0x92   :  { %s1429_s3 = spop %1428 }
  0x93   :  { %s66_s20 = smul.f32 0.996, %s1429_s3  ;;  %v1794_v47 = vstv %s1429_s3 }
  0x95   :  { %v1797_v50 = vstv %s66_s20 }
  0xa4   :  { %v74_v20 = vpop.xlane.xlu0 %73 }
  0xa5   :  { %1439 = vrsqrt.f32 %v74_v20  ;;  %vm81_vm5 = vcmp.eq.f32.partialorder %v74_v20, inf  ;;  %v84_v25 = vand.u32 2147483648, %v74_v20  ;;  %vm83_vm6 = vcmp.eq.f32.partialorder %v74_v20, 0.0 }
  0xa8   :  { %v78_v21 = vpop.xlane.xlu0 %77 }
  0xa9   :  { %1441 = vrsqrt.f32 %v78_v21  ;;  %vm88_vm7 = vcmp.eq.f32.partialorder %v78_v21, inf  ;;  %v91_v31 = vand.u32 2147483648, %v78_v21  ;;  %vm90_vm8 = vcmp.eq.f32.partialorder %v78_v21, 0.0 }
  0xac   :  { %v334_v22 = vpop.xlane.xlu0 %333 }
  0xad   :  { %1443 = vrsqrt.f32 %v334_v22  ;;  %vm337_vm9 = vcmp.eq.f32.partialorder %v334_v22, inf  ;;  %v340_v36 = vand.u32 2147483648, %v334_v22  ;;  %vm339_vm10 = vcmp.eq.f32.partialorder %v334_v22, 0.0 }
  0xaf   :  { %v1440_v23 = vpop.eup %1439 }
  0xb0   :  { %v80_v24 = vmul.f32 %v1440_v23, %v74_v20 }
  0xb2   :  { %v82_v26 = vsel %vm81_vm5, %v74_v20, %v80_v24 }
  0xb3   :  { %v1442_v27 = vpop.eup %1441  ;;  %v85_v28 = vsel %vm83_vm6, %v84_v25, %v82_v26 }
  0xb4   :  { %v93_v29 = vmax.f32 %v85_v28, 1e-15  ;;  %v87_v30 = vmul.f32 %v1442_v27, %v78_v21 }
  0xb6   :  { %v96_v32 = vmul.f32 %v93_v29, %v1785_v18  ;;  %v89_v33 = vsel %vm88_vm7, %v78_v21, %v87_v30 }
  0xb7   :  { %v1444_v34 = vpop.eup %1443  ;;  %v92_v35 = vsel %vm90_vm8, %v91_v31, %v89_v33 }
  0xb8   :  { %v94_v37 = vmax.f32 %v92_v35, 1e-15  ;;  %v336_v38 = vmul.f32 %v1444_v34, %v334_v22  ;;  %v1335_v39 = vclamps-f32 %v96_v32, 15.0 }
  0xba   :  { %v97_v40 = vmul.f32 %v94_v37, %v1785_v18  ;;  %v338_v41 = vsel %vm337_vm9, %v334_v22, %v336_v38  ;;  %1445 = vtanh.f32 %v1335_v39 }
  0xbb   :  { %v341_v42 = vsel %vm339_vm10, %v340_v36, %v338_v41 }
  0xbc   :  { %v1336_v43 = vclamps-f32 %v97_v40, 15.0  ;;  %v342_v44 = vmax.f32 %v341_v42, 1e-15 }
  0xbe   :  { %1447 = vtanh.f32 %v1336_v43  ;;  %v1791_v45 = vmul.f32 %v342_v44, %v1785_v18 }
  0xc0   :  { %v1343_v46 = vclamps-f32 %v1791_v45, 15.0 }
  0xc2   :  { %1449 = vtanh.f32 %v1343_v46 }
  0xc3   :  { %1451 = vrcp.f32 %v96_v32 }
  0xc4   :  { %v1446_v48 = vpop.eup %1445 }
  0xc5   :  { %v111_v49 = vmul.f32 %v1446_v48, %v1794_v47 }
  0xc7   :  { %v113_v51 = vmax.f32 %v111_v49, 1e-15 }
  0xc8   :  { %v1448_v52 = vpop.eup %1447 }
  0xc9   :  { %vm116_vm11 = vcmp.gt.f32.partialorder %v113_v51, %v1797_v50  ;;  %1453 = vrcp.f32 %v113_v51  ;;  %v112_v53 = vmul.f32 %v1448_v52, %v1794_v47 }
  0xca   :  { %1455 = vrcp.f32 %v97_v40  ;;  %v126_v54 = vsel %vm116_vm11, %v1797_v50, %v113_v51 }
  0xcb   :  { %v114_v55 = vmax.f32 %v112_v53, 1e-15  ;;  %v242_v20 = vmul.f32 %v126_v54, %v1785_v18 }
  0xcc   :  { %v1804_v56 = vpop.eup %1449 }
  0xcd   :  { %vm117_vm12 = vcmp.gt.f32.partialorder %v114_v55, %v1797_v50  ;;  %1457 = vrcp.f32 %v114_v55  ;;  %v350_v58 = vmul.f32 %v1804_v56, %v1794_v47  ;;  %v1452_v59 = vpop.eup %1451  ;;  %v1339_v21 = vclamps-f32 %v242_v20, 0.9999999 }
  0xce   :  { %v1810_v57 = vsel %vm117_vm12, %v1797_v50, %v114_v55  ;;  %v106_v61 = vmul.f32 %v1452_v59, %v1446_v48 }
  0xcf   :  { %v1814_v60 = vmax.f32 %v350_v58, 1e-15  ;;  %v243_v22 = vmul.f32 %v1810_v57, %v1785_v18  ;;  %v266_v23 = vsub.f32 0.0, %v1339_v21  ;;  %v248_v27 = vadd.f32 1.0, %v1339_v21 }
  0xd0   :  { %v108_v6 = vmul.f32 %v106_v61, %v1757_v1  ;;  %v251_v32 = vmul.f32 -0.5, %v1339_v21  ;;  %v254_v41 = vand.u32 2147483647, %v1339_v21 }
  0xd1   :  { %vm352_vm13 = vcmp.gt.f32.partialorder %v1814_v60, %v1797_v50  ;;  %v1340_v24 = vclamps-f32 %v243_v22, 0.9999999  ;;  %v268_v25 = vadd.f32 1.0, %v266_v23  ;;  %v271_v30 = vmul.f32 -0.5, %v266_v23 }
  0xd2   :  { %v1823_v63 = vsel %vm352_vm13, %v1797_v50, %v1814_v60  ;;  %v274_v38 = vand.u32 2147483647, %v266_v23  ;;  %v252_v39 = vadd.f32 1.0, %v251_v32  ;;  %vm255_vm15 = vcmp.lt.f32.partialorder %v254_v41, 0.0004427343 }
  0xd3   :  { %v1454_v62 = vpop.eup %1453  ;;  %v267_v26 = vsub.f32 0.0, %v1340_v24  ;;  %1459 = vlog2.f32 %v268_v25  ;;  %v257_v29 = vadd.f32 1.0, %v1340_v24  ;;  %v272_v34 = vadd.f32 1.0, %v271_v30 }
  0xd4   :  { %v1456_v3 = vpop.eup %1455  ;;  %v120_v4 = vmul.f32 %v1454_v62, %v1797_v50  ;;  %1461 = vlog2.f32 %v248_v27  ;;  %v260_v42 = vmul.f32 -0.5, %v1340_v24  ;;  %vm275_vm14 = vcmp.lt.f32.partialorder %v274_v38, 0.0004427343 }
  0xd5   :  { %v107_v7 = vmul.f32 %v1456_v3, %v1448_v52  ;;  %v277_v28 = vadd.f32 1.0, %v267_v26  ;;  %v280_v36 = vmul.f32 -0.5, %v267_v26  ;;  %v273_v46 = vmul.f32 %v272_v34, %v266_v23 }
  0xd6   :  { %v122_v8 = vsel %vm116_vm11, %v120_v4, 1.0  ;;  %v253_v51 = vmul.f32 %v1339_v21, %v252_v39  ;;  %v283_v53 = vand.u32 2147483647, %v267_v26  ;;  %v261_v58 = vadd.f32 1.0, %v260_v42 }
  0xd7   :  { %v1458_v9 = vpop.eup %1457  ;;  %v124_v10 = vmul.f32 %v122_v8, %v108_v6  ;;  %v109_v12 = vmul.f32 %v107_v7, %v1762_v2  ;;  %1463 = vlog2.f32 %v277_v28  ;;  %v281_v48 = vadd.f32 1.0, %v280_v36 }
  0xd8   :  { %v121_v11 = vmul.f32 %v1458_v9, %v1797_v50  ;;  %1465 = vlog2.f32 %v257_v29  ;;  %v263_v62 = vand.u32 2147483647, %v1340_v24  ;;  %vm1860_vm4 = vcmp.lt.f32.partialorder %v283_v53, 0.0004427343 }
  0xd9   :  { %1387 = vmatprep.mubr.msk.f32.mxu0 %vm71_vm0, %v124_v10  ;;  %v282_v3 = vmul.f32 %v281_v48, %v267_v26  ;;  %v262_v10 = vmul.f32 %v1340_v24, %v261_v58  ;;  %v361_v36 = vlaneseq }
  0xda   :  { %v123_v13 = vsel %vm117_vm12, %v121_v11, 1.0  ;;  %vm264_vm5 = vcmp.lt.f32.partialorder %v263_v62, 0.0004427343 }
  0xdb   :  { %v125_v14 = vmul.f32 %v123_v13, %v109_v12 }
  0xdd   :  { %1388 = vmatmul.mubr.msk.f32.vlgmr.msra.gmra.mrb[0].mxu0 %vm71_vm0, %v125_v14  ;;  %v1460_v33 = vpop.eup %1459 }
  0xde   :  { %v1462_v37 = vpop.eup %1461  ;;  %v270_v40 = vmul.f32 0.6931472, %v1460_v33 }
  0xdf   :  { %v250_v44 = vmul.f32 0.6931472, %v1462_v37 }
  0xe0   :  { %v276_v52 = vsel %vm275_vm14, %v273_v46, %v270_v40  ;;  %v362_v40 = vshrl.u32 %v361_v36, 7 }
  0xe1   :  { %v1464_v43 = vpop.eup %1463  ;;  %v256_v61 = vsel %vm255_vm15, %v253_v51, %v250_v44 }
  0xe2   :  { %v1466_v49 = vpop.eup %1465  ;;  %v279_v59 = vmul.f32 0.6931472, %v1464_v43  ;;  %v286_v4 = vsub.f32 %v256_v61, %v276_v52  ;;  %v1886_v53 = vsub.s32 0, %v362_v40 }
  0xe3   :  { %v259_v6 = vmul.f32 0.6931472, %v1466_v49 }
  0xe4   :  { %v285_v12 = vsel %vm1860_vm4, %v282_v3, %v279_v59 }
 0x1b0   :  { %v1835_v15 = vpop.f32.mrb[0].mxu0 }
 0x1b1   :  { %v1837_v1 = vpop.f32.mrb[1].mxu0  ;;  %v213_v17 = vmul.f32 %v1835_v15, %v1835_v15 }
 0x1b2   :  { %v212_v16 = vmul.f32 %v1837_v1, %v1837_v1 }
 0x1b3   :  { %v217_v2 = vsel %vm75_vm1, %v213_v17, 0.0 }
 0x1b4   :  { %v214_v19 = vsel %vm71_vm0, %v212_v16, 0.0 }
 0x1b5   :  { %215 = vadd.xlane.f32.xlu1 %v214_v19  ;;  %v288_v19 = vmul.f32 0.5, %v286_v4 }
 0x1b9   :  { %218 = vadd.xlane.f32.xlu1 %v217_v2  ;;  %v265_v2 = vsel %vm264_vm5, %v262_v10, %v259_v6 }
 0x1ba   :  { %v287_v22 = vsub.f32 %v265_v2, %v285_v12 }
 0x1bc   :  { %v289_v30 = vmul.f32 0.5, %v287_v22 }
 0x242   :  { %v1848_v31 = vpop.xlane.xlu1 %215 }
 0x243   :  { %1467 = vrsqrt.f32 %v1848_v31  ;;  %vm224_vm2 = vcmp.eq.f32.partialorder %v1848_v31, inf  ;;  %v227_v7 = vand.u32 2147483648, %v1848_v31  ;;  %vm226_vm3 = vcmp.eq.f32.partialorder %v1848_v31, 0.0 }
 0x244   :  { %vm220_vm8 = vcmp.le.f32.partialorder %v1848_v31, 0.0 }
 0x246   :  { %v1851_v35 = vpop.xlane.xlu1 %218 }
 0x247   :  { %1469 = vrsqrt.f32 %v1851_v35  ;;  %vm231_vm6 = vcmp.eq.f32.partialorder %v1851_v35, inf  ;;  %v234_v17 = vand.u32 2147483648, %v1851_v35  ;;  %vm233_vm7 = vcmp.eq.f32.partialorder %v1851_v35, 0.0 }
 0x248   :  { %1471 = vrcp.f32 %v126_v54  ;;  %vm221_vm10 = vcmp.le.f32.partialorder %v1851_v35, 0.0 }
 0x249   :  { %1473 = vrcp.f32 %v1810_v57 }
 0x24a   :  { %1475 = vrcp.f32 %v1814_v60 }
 0x24d   :  { %v1468_v55 = vpop.eup %1467 }
 0x24e   :  { %v223_v54 = vmul.f32 %v1468_v55, %v1848_v31 }
 0x250   :  { %v225_v8 = vsel %vm224_vm2, %v1848_v31, %v223_v54  ;;  %v1903_v54 = vstv %s391_s23 }
 0x251   :  { %v1470_v57 = vpop.eup %1469  ;;  %v228_v11 = vsel %vm226_vm3, %v227_v7, %v225_v8 }
 0x252   :  { %v236_v13 = vmax.f32 %v228_v11, 1e-15  ;;  %v230_v14 = vmul.f32 %v1470_v57, %v1851_v35  ;;  %v1472_v16 = vpop.eup %1471 }
 0x253   :  { %v1474_v27 = vpop.eup %1473 }
 0x254   :  { %v240_v20 = vmul.f32 %v1472_v16, %v236_v13  ;;  %v232_v21 = vsel %vm231_vm6, %v1851_v35, %v230_v14  ;;  %v298_v23 = vmul.f32 %v236_v13, %v1785_v18  ;;  %v1476_v37 = vpop.eup %1475 }
 0x255   :  { %v235_v24 = vsel %vm233_vm7, %v234_v17, %v232_v21  ;;  %v354_v44 = vmul.f32 %v1476_v37, %v1797_v50  ;;  %v1930_v37 = vstv %s373_s26 }
 0x256   :  { %v237_v25 = vmax.f32 %v235_v24, 1e-15  ;;  %v290_v26 = vmul.f32 %v288_v19, %v240_v20  ;;  %1477 = vrcp.f32 %v298_v23 }
 0x257   :  { %v355_v55 = vsel %vm352_vm13, %v354_v44, 1.0 }
 0x258   :  { %v241_v28 = vmul.f32 %v1474_v27, %v237_v25  ;;  %v1341_v29 = vclamps-f32 %v290_v26, 15.0  ;;  %v299_v32 = vmul.f32 %v237_v25, %v1785_v18 }
 0x25a   :  { %1479 = vtanh.f32 %v1341_v29  ;;  %v291_v33 = vmul.f32 %v289_v30, %v241_v28 }
 0x25b   :  { %1481 = vrcp.f32 %v1791_v45 }
 0x25c   :  { %v1342_v34 = vclamps-f32 %v291_v33, 15.0  ;;  %1483 = vrcp.f32 %v299_v32 }
 0x25e   :  { %1485 = vtanh.f32 %v1342_v34 }
 0x260   :  { %v1478_v38 = vpop.eup %1477 }
 0x264   :  { %v1480_v39 = vpop.eup %1479 }
 0x265   :  { %v1482_v41 = vpop.eup %1481  ;;  %v302_v42 = vmul.f32 %v1480_v39, %v1478_v38  ;;  %v312_v43 = vmul.f32 %v1480_v39, %v1794_v47 }
 0x266   :  { %v348_v46 = vmul.f32 %v1482_v41, %v1804_v56  ;;  %v1484_v48 = vpop.eup %1483 }
 0x267   :  { %v304_v45 = vmul.f32 %v302_v42, %v1837_v1  ;;  %v314_v49 = vsel %vm220_vm8, 0.0, %v312_v43  ;;  %v360_v1 = vmul.f32 %v1823_v63, %v1823_v63 }
 0x268   :  { %v1486_v51 = vpop.eup %1485  ;;  %v316_v52 = vmax.f32 %v314_v49, 1e-15  ;;  %v349_v59 = vmul.f32 %v348_v46, %v1768_v5 }
 0x269   :  { %v303_v56 = vmul.f32 %v1486_v51, %v1484_v48  ;;  %v313_v58 = vmul.f32 %v1486_v51, %v1794_v47  ;;  %v398_v6 = vrot.slane %v360_v1, %v1886_v53  ;;  %v310_v23 = vsel %vm220_vm8, 0.0, %v304_v45 }
 0x26a   :  { %vm318_vm9 = vcmp.gt.f32.partialorder %v316_v52, %v1797_v50  ;;  %1487 = vrcp.f32 %v316_v52  ;;  %v356_v3 = vmul.f32 %v355_v55, %v349_v59  ;;  %v380_v35 = vmul.f32 %v360_v1, %v1751_v0 }
 0x26b   :  { %v328_v61 = vsel %vm318_vm9, %v1797_v50, %v316_v52  ;;  %v305_v60 = vmul.f32 %v1835_v15, %v303_v56  ;;  %v315_v62 = vsel %vm221_vm10, 0.0, %v313_v58 }
 0x26c   :  { %v358_v63 = vmul.f32 %v328_v61, %v328_v61  ;;  %v317_v4 = vmax.f32 %v315_v62, 1e-15  ;;  %v364_v8 = vrot.slane %v356_v3, %v1886_v53  ;;  %v384_v40 = vrot.slane %v380_v35, %v1886_v53 }
 0x26d   :  { %v311_v30 = vsel %vm221_vm10, 0.0, %v305_v60 }
 0x26e   :  { %vm319_vm11 = vcmp.gt.f32.partialorder %v317_v4, %v1797_v50  ;;  %1489 = vrcp.f32 %v317_v4  ;;  %v387_v5 = vmul.f32 %v358_v63, %v1751_v0  ;;  %v393_v7 = vmul.f32 %v1903_v54, %v358_v63 }
 0x26f   :  { %v329_v15 = vsel %vm319_vm11, %v1797_v50, %v317_v4 }
 0x270   :  { %v359_v9 = vmul.f32 %v329_v15, %v329_v15  ;;  %v389_v57 = vsub.f32 1.0, %v387_v5  ;;  %v399_v10 = vmul.f32 %v398_v6, %v393_v7 }
 0x272   :  { %v409_v11 = vmul.f32 %v389_v57, %v364_v8  ;;  %v427_v12 = vmul.f32 %v389_v57, %v389_v57  ;;  %v388_v13 = vmul.f32 %v359_v9, %v1751_v0  ;;  %v394_v14 = vmul.f32 %v1903_v54, %v359_v9 }
 0x274   :  { %v1488_v16 = vpop.eup %1487  ;;  %v429_v17 = vmul.f32 %v427_v12, %v398_v6  ;;  %v390_v19 = vsub.f32 1.0, %v388_v13  ;;  %v400_v2 = vmul.f32 %v398_v6, %v394_v14 }
 0x275   :  { %v322_v20 = vmul.f32 %v1488_v16, %v1797_v50 }
 0x276   :  { %v410_v21 = vmul.f32 %v390_v19, %v364_v8  ;;  %v428_v22 = vmul.f32 %v390_v19, %v390_v19 }
 0x277   :  { %v324_v24 = vsel %vm318_vm9, %v322_v20, 1.0 }
 0x278   :  { %v1490_v25 = vpop.eup %1489  ;;  %v326_v26 = vmul.f32 %v324_v24, %v310_v23  ;;  %v430_v27 = vmul.f32 %v428_v22, %v398_v6 }
 0x279   :  { %v323_v28 = vmul.f32 %v1490_v25, %v1797_v50 }
 0x27a   :  { %v365_v29 = vmul.f32 %v364_v8, %v326_v26 }
 0x27b   :  { %v325_v32 = vsel %vm319_vm11, %v323_v28, 1.0 }
 0x27c   :  { %v367_v33 = vsel %vm71_vm0, %v365_v29, 0.0  ;;  %v327_v34 = vmul.f32 %v325_v32, %v311_v30 }
 0x27d   :  { %368 = vadd.xlane.f32.xlu1 %v367_v33 }
 0x27e   :  { %v366_v31 = vmul.f32 %v364_v8, %v327_v34 }
 0x280   :  { %v370_v36 = vsel %vm75_vm1, %v366_v31, 0.0 }
 0x281   :  { %371 = vadd.xlane.f32.xlu0 %v370_v36 }
 0x30a   :  { %v369_v38 = vpop.xlane.xlu1 %368 }
 0x30b   :  { %v375_v39 = vmul.f32 %v1930_v37, %v369_v38 }
 0x30d   :  { %v377_v41 = vadd.f32 1.0, %v375_v39 }
 0x30e   :  { %v372_v42 = vpop.xlane.xlu0 %371 }
 0x30f   :  { %v385_v43 = vadd.f32 %v384_v40, %v377_v41  ;;  %v401_v44 = vadd.f32 %v399_v10, %v377_v41  ;;  %v376_v46 = vmul.f32 %v1930_v37, %v372_v42 }
 0x311   :  { %v403_v48 = vmax.f32 %v401_v44, 1e-15  ;;  %v407_v45 = vmul.f32 %v385_v43, %v326_v26  ;;  %v415_v49 = vmul.f32 %v385_v43, %v385_v43  ;;  %v419_v51 = vmul.f32 2.0, %v385_v43 }
 0x312   :  { %v378_v52 = vadd.f32 1.0, %v376_v46 }
 0x313   :  { %1491 = vrcp.f32 %v403_v48  ;;  %v411_v55 = vadd.f32 %v409_v11, %v407_v45  ;;  %v417_v56 = vmul.f32 %v415_v49, %v358_v63  ;;  %v421_v58 = vmul.f32 %v419_v51, %v389_v57 }
 0x314   :  { %v386_v1 = vadd.f32 %v384_v40, %v378_v52  ;;  %v402_v59 = vadd.f32 %v400_v2, %v378_v52 }
 0x315   :  { %v423_v61 = vmul.f32 %v421_v58, %v369_v38 }
 0x316   :  { %v404_v60 = vmax.f32 %v402_v59, 1e-15  ;;  %v408_v62 = vmul.f32 %v386_v1, %v327_v34  ;;  %v416_v3 = vmul.f32 %v386_v1, %v386_v1  ;;  %v420_v4 = vmul.f32 2.0, %v386_v1 }
 0x317   :  { %v425_v6 = vadd.f32 %v423_v61, %v417_v56 }
 0x318   :  { %1493 = vrcp.f32 %v404_v60  ;;  %v412_v5 = vadd.f32 %v410_v21, %v408_v62  ;;  %v418_v7 = vmul.f32 %v416_v3, %v359_v9  ;;  %v422_v15 = vmul.f32 %v420_v4, %v390_v19 }
 0x319   :  { %v431_v8 = vadd.f32 %v429_v17, %v425_v6 }
 0x31a   :  { %v424_v10 = vmul.f32 %v422_v15, %v372_v42 }
 0x31b   :  { %v433_v12 = vmax.f32 %v431_v8, 0.0 }
 0x31c   :  { %v426_v13 = vadd.f32 %v424_v10, %v418_v7 }
 0x31d   :  { %v1492_v14 = vpop.eup %1491  ;;  %1495 = vrsqrt.f32 %v433_v12  ;;  %vm437_vm12 = vcmp.eq.f32.partialorder %v433_v12, inf  ;;  %v440_v23 = vand.u32 2147483648, %v433_v12  ;;  %vm439_vm13 = vcmp.eq.f32.partialorder %v433_v12, 0.0 }
 0x31e   :  { %v432_v63 = vadd.f32 %v430_v27, %v426_v13  ;;  %v413_v57 = vmul.f32 %v1492_v14, %v411_v55 }
 0x320   :  { %v434_v11 = vmax.f32 %v432_v63, 0.0 }
 0x322   :  { %v1494_v16 = vpop.eup %1493  ;;  %1497 = vrsqrt.f32 %v434_v11  ;;  %vm444_vm14 = vcmp.eq.f32.partialorder %v434_v11, inf  ;;  %v447_v26 = vand.u32 2147483648, %v434_v11  ;;  %vm446_vm15 = vcmp.eq.f32.partialorder %v434_v11, 0.0 }
 0x323   :  { %v414_v2 = vmul.f32 %v1494_v16, %v412_v5 }
 0x327   :  { %v1496_v20 = vpop.eup %1495 }
 0x328   :  { %v436_v22 = vmul.f32 %v1496_v20, %v433_v12 }
 0x32a   :  { %v438_v24 = vsel %vm437_vm12, %v433_v12, %v436_v22 }
 0x32b   :  { %v441_v9 = vsel %vm439_vm13, %v440_v23, %v438_v24  ;;  %vm665_vm13 = vcmask 60416  }
 0x32c   :  { %v1498_v19 = vpop.eup %1497  ;;  %v449_v17 = vmul.f32 %v1492_v14, %v441_v9 }
 0x32d   :  { %v443_v21 = vmul.f32 %v1498_v19, %v434_v11 }
 0x32e   :  { %v451_v25 = vmax.f32 %v449_v17, 1e-15 }
 0x32f   :  { %v445_v28 = vsel %vm444_vm14, %v434_v11, %v443_v21  ;;  %vm661_vm14 = vcmask 64512  }
 0x330   :  { %vm453_vm2 = vcmp.gt.f32.partialorder %v451_v25, %v1797_v50  ;;  %1499 = vrcp.f32 %v451_v25  ;;  %v448_v27 = vsel %vm446_vm15, %v447_v26, %v445_v28 }
 0x331   :  { %v463_v29 = vsel %vm453_vm2, %v1797_v50, %v451_v25  ;;  %v450_v30 = vmul.f32 %v1494_v16, %v448_v27 }
 0x332   :  { %v465_v32 = vmul.f32 %v463_v29, %v1785_v18 }
 0x333   :  { %v452_v33 = vmax.f32 %v450_v30, 1e-15 }
 0x334   :  { %v1344_v34 = vclamps-f32 %v465_v32, 0.9999999 }
 0x335   :  { %vm454_vm3 = vcmp.gt.f32.partialorder %v452_v33, %v1797_v50  ;;  %1501 = vrcp.f32 %v452_v33 }
 0x336   :  { %v471_v31 = vadd.f32 1.0, %v1344_v34  ;;  %v489_v36 = vsub.f32 0.0, %v1344_v34  ;;  %v464_v35 = vsel %vm454_vm3, %v1797_v50, %v452_v33  ;;  %v474_v43 = vmul.f32 -0.5, %v1344_v34 }
 0x337   :  { %v466_v39 = vmul.f32 %v464_v35, %v1785_v18  ;;  %v477_v59 = vand.u32 2147483647, %v1344_v34 }
 0x338   :  { %1503 = vlog2.f32 %v471_v31  ;;  %v491_v38 = vadd.f32 1.0, %v489_v36  ;;  %v494_v46 = vmul.f32 -0.5, %v489_v36  ;;  %v475_v52 = vadd.f32 1.0, %v474_v43 }
 0x339   :  { %v1345_v42 = vclamps-f32 %v466_v39, 0.9999999  ;;  %v497_v61 = vand.u32 2147483647, %v489_v36  ;;  %vm478_vm4 = vcmp.lt.f32.partialorder %v477_v59, 0.0004427343 }
 0x33a   :  { %v1500_v40 = vpop.eup %1499  ;;  %1505 = vlog2.f32 %v491_v38  ;;  %v495_v58 = vadd.f32 1.0, %v494_v46  ;;  %v476_v6 = vmul.f32 %v1344_v34, %v475_v52 }
 0x33b   :  { %v457_v41 = vmul.f32 %v1500_v40, %v1797_v50  ;;  %v480_v48 = vadd.f32 1.0, %v1345_v42  ;;  %v490_v49 = vsub.f32 0.0, %v1345_v42  ;;  %v483_v15 = vmul.f32 -0.5, %v1345_v42  ;;  %v576_v40 = vld [vmem:[%s2192_s5 + $0x8] sm:$0xff] }
 0x33c   :  { %v496_v7 = vmul.f32 %v495_v58, %v489_v36  ;;  %vm498_vm5 = vcmp.lt.f32.partialorder %v497_v61, 0.0004427343  ;;  %v486_v16 = vand.u32 2147483647, %v1345_v42 }
 0x33d   :  { %v459_v44 = vsel %vm453_vm2, %v457_v41, 1.0  ;;  %1507 = vlog2.f32 %v480_v48  ;;  %v500_v56 = vadd.f32 1.0, %v490_v49  ;;  %v503_v8 = vmul.f32 -0.5, %v490_v49 }
 0x33e   :  { %v461_v45 = vmul.f32 %v459_v44, %v413_v57  ;;  %1509 = vrcp.f32 %v465_v32  ;;  %v484_v63 = vadd.f32 1.0, %v483_v15  ;;  %v506_v20 = vand.u32 2147483647, %v490_v49 }
 0x33f   :  { %v1502_v51 = vpop.eup %1501  ;;  %1511 = vlog2.f32 %v500_v56  ;;  %v504_v57 = vadd.f32 1.0, %v503_v8  ;;  %vm487_vm6 = vcmp.lt.f32.partialorder %v486_v16, 0.0004427343 }
 0x340   :  { %v458_v55 = vmul.f32 %v1502_v51, %v1797_v50  ;;  %1513 = vrcp.f32 %v466_v39  ;;  %v485_v9 = vmul.f32 %v1345_v42, %v484_v63  ;;  %vm507_vm7 = vcmp.lt.f32.partialorder %v506_v20, 0.0004427343  ;;  %v575_v39 = vld [vmem:[%s2192_s5] sm:$0xff] }
 0x341   :  { %v505_v17 = vmul.f32 %v504_v57, %v490_v49  ;;  %v1418_v41 = vpack.c.bf16 %v576_v40, %v575_v39 }
 0x342   :  { %v1504_v1 = vpop.eup %1503  ;;  %v460_v60 = vsel %vm454_vm3, %v458_v55, 1.0 }
 0x343   :  { %v473_v62 = vmul.f32 0.6931472, %v1504_v1  ;;  %v462_v3 = vmul.f32 %v460_v60, %v414_v2  ;;  %1419 = vmatprep.subr.bf16.mxu1 %v1418_v41 }
 0x344   :  { %v1506_v4 = vpop.eup %1505  ;;  %1421 = vmatpush3.bf16.msra.mxu1 %v1418_v41 }
 0x345   :  { %v493_v5 = vmul.f32 0.6931472, %v1506_v4  ;;  %v479_v10 = vsel %vm478_vm4, %v476_v6, %v473_v62 }
 0x347   :  { %v499_v12 = vsel %vm498_vm5, %v496_v7, %v493_v5  ;;  %v1508_v14 = vpop.eup %1507 }
 0x348   :  { %v509_v13 = vsub.f32 %v479_v10, %v499_v12  ;;  %v1510_v22 = vpop.eup %1509  ;;  %v482_v2 = vmul.f32 0.6931472, %v1508_v14 }
 0x349   :  { %v1512_v23 = vpop.eup %1511 }
 0x34a   :  { %v511_v11 = vmul.f32 0.5, %v509_v13  ;;  %v502_v19 = vmul.f32 0.6931472, %v1512_v23  ;;  %v488_v25 = vsel %vm487_vm6, %v485_v9, %v482_v2  ;;  %v1514_v32 = vpop.eup %1513 }
 0x34c   :  { %v515_v24 = vmul.f32 %v1510_v22, %v511_v11  ;;  %v508_v26 = vsel %vm507_vm7, %v505_v17, %v502_v19 }
 0x34d   :  { %v510_v27 = vsub.f32 %v488_v25, %v508_v26 }
 0x34e   :  { %v517_v21 = vmul.f32 %v515_v24, %v461_v45 }
 0x34f   :  { %v512_v30 = vmul.f32 0.5, %v510_v27 }
 0x350   :  { %v519_v28 = vmax.f32 %v517_v21, 0.0  ;;  %v1979_v21 = vld [vmem:[%s2193_s6] sm:$0x1] }
 0x351   :  { %v516_v34 = vmul.f32 %v1514_v32, %v512_v30 }
 0x352   :  { %v521_v29 = vmul.f32 %v519_v28, %v519_v28 }
 0x353   :  { %v518_v31 = vmul.f32 %v516_v34, %v462_v3 }
 0x354   :  { %v523_v33 = vsel %vm71_vm0, %v521_v29, 0.0  ;;  %v779_v29 = vmul.f32 %v1979_v21, %v1979_v21 }
 0x355   :  { %524 = vadd.xlane.f32.xlu1 %v523_v33  ;;  %v520_v36 = vmax.f32 %v518_v31, 0.0 }
 0x357   :  { %v522_v35 = vmul.f32 %v520_v36, %v520_v36 }
 0x359   :  { %v526_v38 = vsel %vm75_vm1, %v522_v35, 0.0 }
 0x35a   :  { %527 = vadd.xlane.f32.xlu0 %v526_v38 }
 0x3e2   :  { %v525_v42 = vpop.xlane.xlu1 %524 }
 0x3e3   :  { %1515 = vrsqrt.f32 %v525_v42  ;;  %vm531_vm8 = vcmp.eq.f32.partialorder %v525_v42, inf  ;;  %v534_v48 = vand.u32 2147483648, %v525_v42  ;;  %vm533_vm1 = vcmp.eq.f32.partialorder %v525_v42, 0.0 }
 0x3e7   :  { %v528_v43 = vpop.xlane.xlu0 %527 }
 0x3e8   :  { %1517 = vrsqrt.f32 %v528_v43  ;;  %vm538_vm9 = vcmp.eq.f32.partialorder %v528_v43, inf  ;;  %v541_v1 = vand.u32 2147483648, %v528_v43  ;;  %vm540_vm10 = vcmp.eq.f32.partialorder %v528_v43, 0.0 }
 0x3ed   :  { %v1516_v44 = vpop.eup %1515 }
 0x3ee   :  { %v530_v46 = vmul.f32 %v1516_v44, %v525_v42 }
 0x3f0   :  { %v532_v45 = vsel %vm531_vm8, %v525_v42, %v530_v46 }
 0x3f1   :  { %v535_v49 = vsel %vm533_vm1, %v534_v48, %v532_v45 }
 0x3f2   :  { %v543_v51 = vmax.f32 %v535_v49, 1e-15  ;;  %v1518_v55 = vpop.eup %1517 }
 0x3f3   :  { %v537_v56 = vmul.f32 %v1518_v55, %v528_v43 }
 0x3f4   :  { %v545_v52 = vmul.f32 %v543_v51, %v1785_v18 }
 0x3f5   :  { %v539_v59 = vsel %vm538_vm9, %v528_v43, %v537_v56 }
 0x3f6   :  { %v1346_v58 = vclamps-f32 %v545_v52, 15.0  ;;  %v542_v61 = vsel %vm540_vm10, %v541_v1, %v539_v59 }
 0x3f7   :  { %v544_v60 = vmax.f32 %v542_v61, 1e-15 }
 0x3f8   :  { %1519 = vtanh.f32 %v1346_v58 }
 0x3f9   :  { %v546_v62 = vmul.f32 %v544_v60, %v1785_v18 }
 0x3fb   :  { %v1347_v3 = vclamps-f32 %v546_v62, 15.0 }
 0x3fd   :  { %1521 = vtanh.f32 %v1347_v3 }
 0x3fe   :  { %1523 = vrcp.f32 %v545_v52 }
 0x402   :  { %v1520_v4 = vpop.eup %1519 }
 0x403   :  { %v559_v6 = vmul.f32 %v1520_v4, %v1794_v47 }
 0x405   :  { %v561_v5 = vmax.f32 %v559_v6, 1e-15 }
 0x407   :  { %vm563_vm11 = vcmp.gt.f32.partialorder %v561_v5, %v1797_v50  ;;  %1525 = vrcp.f32 %v561_v5  ;;  %v1522_v15 = vpop.eup %1521 }
 0x408   :  { %v1965_v7 = vsel %vm563_vm11, %v1797_v50, %v561_v5  ;;  %v560_v8 = vmul.f32 %v1522_v15, %v1794_v47  ;;  %1527 = vrcp.f32 %v546_v62  ;;  %v1524_v10 = vpop.eup %1523 }
 0x409   :  { %v555_v13 = vmul.f32 %v1524_v10, %v1520_v4  ;;  %v691_v34 = vmul.f32 %v1965_v7, %v1785_v18 }
 0x40a   :  { %v562_v12 = vmax.f32 %v560_v8, 1e-15 }
 0x40b   :  { %v557_v11 = vmul.f32 %v555_v13, %v519_v28 }
 0x40c   :  { %vm564_vm12 = vcmp.gt.f32.partialorder %v562_v12, %v1797_v50  ;;  %1529 = vrcp.f32 %v562_v12 }
 0x40d   :  { %v1970_v63 = vsel %vm564_vm12, %v1797_v50, %v562_v12 }
 0x40e   :  { %v692_v31 = vmul.f32 %v1970_v63, %v1785_v18 }
 0x410   :  { %v1351_v35 = vclamps-f32 %v692_v31, 0.9999999 }
 0x411   :  { %v1526_v14 = vpop.eup %1525 }
 0x412   :  { %v567_v57 = vmul.f32 %v1526_v14, %v1797_v50  ;;  %v1528_v22 = vpop.eup %1527  ;;  %v716_v39 = vsub.f32 0.0, %v1351_v35  ;;  %v706_v43 = vadd.f32 1.0, %v1351_v35  ;;  %v709_v52 = vmul.f32 -0.5, %v1351_v35 }
 0x413   :  { %v556_v2 = vmul.f32 %v1528_v22, %v1522_v15  ;;  %v712_v12 = vand.u32 2147483647, %v1351_v35 }
 0x414   :  { %v569_v16 = vsel %vm563_vm11, %v567_v57, 1.0  ;;  %v726_v41 = vadd.f32 1.0, %v716_v39  ;;  %v729_v48 = vmul.f32 -0.5, %v716_v39  ;;  %v732_v4 = vand.u32 2147483647, %v716_v39 }
 0x415   :  { %v571_v20 = vmul.f32 %v569_v16, %v557_v11  ;;  %v558_v9 = vmul.f32 %v556_v2, %v520_v36  ;;  %v1350_v36 = vclamps-f32 %v691_v34, 0.9999999  ;;  %v710_v5 = vadd.f32 1.0, %v709_v52 }
 0x416   :  { %v1530_v23 = vpop.eup %1529  ;;  %v730_v59 = vadd.f32 1.0, %v729_v48  ;;  %vm733_vm2 = vcmp.lt.f32.partialorder %v732_v4, 0.0004427343  ;;  %vm713_vm4 = vcmp.lt.f32.partialorder %v712_v12, 0.0004427343 }
 0x417   :  { %1394 = vmatprep.mubr.msk.f32.mxu1 %vm71_vm0, %v571_v20  ;;  %v568_v24 = vmul.f32 %v1530_v23, %v1797_v50  ;;  %v715_v38 = vsub.f32 0.0, %v1350_v36  ;;  %v697_v42 = vadd.f32 1.0, %v1350_v36  ;;  %v700_v45 = vmul.f32 -0.5, %v1350_v36 }
 0x418   :  { %v703_v6 = vand.u32 2147483647, %v1350_v36  ;;  %v731_v14 = vmul.f32 %v730_v59, %v716_v39  ;;  %v711_v16 = vmul.f32 %v1351_v35, %v710_v5 }
 0x419   :  { %v570_v19 = vsel %vm564_vm12, %v568_v24, 1.0  ;;  %v717_v40 = vadd.f32 1.0, %v715_v38  ;;  %v720_v44 = vmul.f32 -0.5, %v715_v38  ;;  %v723_v1 = vand.u32 2147483647, %v715_v38 }
 0x41a   :  { %v572_v17 = vmul.f32 %v570_v19, %v558_v9  ;;  %v701_v60 = vadd.f32 1.0, %v700_v45  ;;  %vm704_vm3 = vcmp.lt.f32.partialorder %v703_v6, 0.0004427343 }
 0x41b   :  { %1531 = vlog2.f32 %v717_v40  ;;  %v721_v56 = vadd.f32 1.0, %v720_v44  ;;  %vm724_vm15 = vcmp.lt.f32.partialorder %v723_v1, 0.0004427343 }
 0x41c   :  { %1395 = vmatmul.mubr.msk.f32.vlgmr.msra.gmra.mrb[0].mxu1 %vm71_vm0, %v572_v17  ;;  %vm780_vm0 = vcmask 57344   ;;  %1533 = vlog2.f32 %v726_v41  ;;  %v702_v57 = vmul.f32 %v1350_v36, %v701_v60 }
 0x41d   :  { %v781_v33 = vsel %vm780_vm0, %v779_v29, 0.0  ;;  %1535 = vlog2.f32 %v697_v42  ;;  %v722_v10 = vmul.f32 %v721_v56, %v715_v38 }
 0x41e   :  { %1537 = vlog2.f32 %v706_v43 }
 0x425   :  { %v1532_v51 = vpop.eup %1531 }
 0x426   :  { %v1534_v55 = vpop.eup %1533  ;;  %v719_v62 = vmul.f32 0.6931472, %v1532_v51 }
 0x427   :  { %v1536_v58 = vpop.eup %1535  ;;  %v728_v15 = vmul.f32 0.6931472, %v1534_v55 }
 0x428   :  { %v1538_v61 = vpop.eup %1537  ;;  %v699_v8 = vmul.f32 0.6931472, %v1536_v58  ;;  %v725_v11 = vsel %vm724_vm15, %v722_v10, %v719_v62 }
 0x429   :  { %v708_v13 = vmul.f32 0.6931472, %v1538_v61  ;;  %v734_v20 = vsel %vm733_vm2, %v731_v14, %v728_v15 }
 0x42a   :  { %v705_v2 = vsel %vm704_vm3, %v702_v57, %v699_v8 }
 0x42b   :  { %v735_v24 = vsub.f32 %v705_v2, %v725_v11 }
 0x42d   :  { %v737_v38 = vmul.f32 0.5, %v735_v24 }
 0x4ef   :  { %v1981_v25 = vpop.f32.mrb[0].mxu1 }
 0x4f0   :  { %v660_v26 = vmul.f32 %v1981_v25, %v1981_v25  ;;  %v1985_v28 = vpop.f32.mrb[1].mxu1 }
 0x4f1   :  { %v659_v27 = vmul.f32 %v1985_v28, %v1985_v28 }
 0x4f2   :  { %v666_v30 = vsel %vm665_vm13, %v660_v26, 0.0 }
 0x4f3   :  { %667 = vadd.xlane.f32.xlu0 %v666_v30  ;;  %v662_v32 = vsel %vm661_vm14, %v659_v27, 0.0 }
 0x4f4   :  { %663 = vadd.xlane.f32.xlu1 %v662_v32 }
 0x4f8   :  { %782 = vadd.xlane.f32.xlu1 %v781_v33 }
 0x580   :  { %v1997_v46 = vpop.xlane.xlu0 %667 }
 0x581   :  { %1539 = vrsqrt.f32 %v1997_v46  ;;  %v2000_v49 = vpop.xlane.xlu1 %663  ;;  %vm680_vm5 = vcmp.eq.f32.partialorder %v1997_v46, inf  ;;  %vm682_vm6 = vcmp.eq.f32.partialorder %v1997_v46, 0.0  ;;  %vm670_vm10 = vcmp.le.f32.partialorder %v1997_v46, 0.0 }
 0x582   :  { %1541 = vrsqrt.f32 %v2000_v49  ;;  %vm673_vm7 = vcmp.eq.f32.partialorder %v2000_v49, inf  ;;  %v676_v27 = vand.u32 2147483648, %v2000_v49  ;;  %vm675_vm8 = vcmp.eq.f32.partialorder %v2000_v49, 0.0 }
 0x583   :  { %vm669_vm11 = vcmp.le.f32.partialorder %v2000_v49, 0.0 }
 0x585   :  { %v783_v3 = vpop.xlane.xlu1 %782 }
 0x586   :  { %1543 = vrsqrt.f32 %v783_v3  ;;  %vm786_vm1 = vcmp.eq.f32.partialorder %v783_v3, inf  ;;  %v789_v41 = vand.u32 2147483648, %v783_v3  ;;  %vm788_vm9 = vcmp.eq.f32.partialorder %v783_v3, 0.0 }
 0x587   :  { %1545 = vrcp.f32 %v1970_v63  ;;  %v714_v63 = vsel %vm713_vm4, %v711_v16, %v708_v13 }
 0x588   :  { %1547 = vrcp.f32 %v1965_v7  ;;  %v683_v7 = vand.u32 2147483648, %v1997_v46  ;;  %v736_v17 = vsub.f32 %v714_v63, %v734_v20 }
 0x58a   :  { %v738_v42 = vmul.f32 0.5, %v736_v17 }
 0x58b   :  { %v1540_v22 = vpop.eup %1539 }
 0x58c   :  { %v1542_v23 = vpop.eup %1541  ;;  %v679_v9 = vmul.f32 %v1540_v22, %v1997_v46 }
 0x58d   :  { %v672_v19 = vmul.f32 %v1542_v23, %v2000_v49 }
 0x58e   :  { %v681_v26 = vsel %vm680_vm5, %v1997_v46, %v679_v9 }
 0x58f   :  { %v684_v29 = vsel %vm682_vm6, %v683_v7, %v681_v26  ;;  %v674_v30 = vsel %vm673_vm7, %v2000_v49, %v672_v19 }
 0x590   :  { %v1544_v32 = vpop.eup %1543  ;;  %v686_v33 = vmax.f32 %v684_v29, 1e-15  ;;  %v677_v34 = vsel %vm675_vm8, %v676_v27, %v674_v30 }
 0x591   :  { %v1546_v31 = vpop.eup %1545  ;;  %v685_v36 = vmax.f32 %v677_v34, 1e-15  ;;  %v785_v35 = vmul.f32 %v1544_v32, %v783_v3 }
 0x592   :  { %v1548_v39 = vpop.eup %1547  ;;  %v690_v40 = vmul.f32 %v1546_v31, %v686_v33  ;;  %v748_v43 = vmul.f32 %v686_v33, %v1785_v18 }
 0x593   :  { %v689_v44 = vmul.f32 %v1548_v39, %v685_v36  ;;  %v787_v48 = vsel %vm786_vm1, %v783_v3, %v785_v35  ;;  %v747_v52 = vmul.f32 %v685_v36, %v1785_v18 }
 0x594   :  { %v790_v45 = vsel %vm788_vm9, %v789_v41, %v787_v48  ;;  %v740_v51 = vmul.f32 %v738_v42, %v690_v40  ;;  %1549 = vrcp.f32 %v748_v43 }
 0x595   :  { %v791_v55 = vmax.f32 %v790_v45, 1e-15  ;;  %v739_v56 = vmul.f32 %v737_v38, %v689_v44 }
 0x596   :  { %v1353_v58 = vclamps-f32 %v740_v51, 15.0 }
 0x597   :  { %v792_v1 = vmul.f32 %v791_v55, %v1785_v18  ;;  %v1352_v59 = vclamps-f32 %v739_v56, 15.0 }
 0x598   :  { %1551 = vtanh.f32 %v1353_v58 }
 0x599   :  { %v1354_v61 = vclamps-f32 %v792_v1, 15.0  ;;  %1553 = vrcp.f32 %v747_v52 }
 0x59a   :  { %1555 = vtanh.f32 %v1352_v59 }
 0x59b   :  { %1557 = vtanh.f32 %v1354_v61 }
 0x59c   :  { %1559 = vrcp.f32 %v792_v1 }
 0x59e   :  { %v1550_v60 = vpop.eup %1549 }
 0x5a2   :  { %v1552_v62 = vpop.eup %1551 }
 0x5a3   :  { %v1554_v4 = vpop.eup %1553  ;;  %v752_v3 = vmul.f32 %v1552_v62, %v1550_v60  ;;  %v762_v6 = vmul.f32 %v1552_v62, %v1794_v47 }
 0x5a4   :  { %v1556_v5 = vpop.eup %1555 }
 0x5a5   :  { %v1558_v15 = vpop.eup %1557  ;;  %v754_v8 = vmul.f32 %v1981_v25, %v752_v3  ;;  %v764_v10 = vsel %vm670_vm10, 0.0, %v762_v6  ;;  %v751_v12 = vmul.f32 %v1556_v5, %v1554_v4  ;;  %v761_v13 = vmul.f32 %v1556_v5, %v1794_v47 }
 0x5a6   :  { %v766_v14 = vmax.f32 %v764_v10, 1e-15  ;;  %v799_v57 = vmul.f32 %v1558_v15, %v1794_v47  ;;  %v1560_v32 = vpop.eup %1559 }
 0x5a7   :  { %v753_v11 = vmul.f32 %v751_v12, %v1985_v28  ;;  %v763_v16 = vsel %vm669_vm11, 0.0, %v761_v13  ;;  %v797_v36 = vmul.f32 %v1560_v32, %v1558_v15  ;;  %v760_v42 = vsel %vm670_vm10, 0.0, %v754_v8 }
 0x5a8   :  { %vm768_vm12 = vcmp.gt.f32.partialorder %v766_v14, %v1797_v50  ;;  %1561 = vrcp.f32 %v766_v14  ;;  %v800_v25 = vmax.f32 %v799_v57, 1e-15  ;;  %v765_v22 = vmax.f32 %v763_v16, 1e-15 }
 0x5a9   :  { %v778_v20 = vsel %vm768_vm12, %v1797_v50, %v766_v14  ;;  %v798_v45 = vmul.f32 %v797_v36, %v1979_v21  ;;  %v759_v56 = vsel %vm669_vm11, 0.0, %v753_v11  ;;  %vm1673_vm11 = vmmov 0  }
 0x5aa   :  { %vm801_vm0 = vcmp.gt.f32.partialorder %v800_v25, %v1797_v50  ;;  %1563 = vrcp.f32 %v800_v25  ;;  %v2034_v2 = vmul.f32 %v778_v20, %v778_v20  ;;  %vm767_vm15 = vcmp.gt.f32.partialorder %v765_v22, %v1797_v50 }
 0x5ab   :  { %1565 = vrcp.f32 %v765_v22  ;;  %v806_v28 = vsel %vm801_vm0, %v1797_v50, %v800_v25  ;;  %v777_v23 = vsel %vm767_vm15, %v1797_v50, %v765_v22 }
 0x5ac   :  { %v809_v24 = vmul.f32 %v806_v28, %v806_v28  ;;  %v834_v9 = vmul.f32 %v2034_v2, %v1751_v0  ;;  %v2045_v63 = vmul.f32 %v777_v23, %v777_v23  ;;  %v838_v19 = vmul.f32 %v2034_v2, %v1903_v54 }
 0x5ae   :  { %v836_v7 = vsub.f32 1.0, %v834_v9  ;;  %v842_v17 = vrot.slane %v809_v24, %v1886_v53  ;;  %v833_v26 = vmul.f32 %v2045_v63, %v1751_v0  ;;  %v837_v27 = vmul.f32 %v2045_v63, %v1903_v54 }
 0x5af   :  { %v826_v3 = vmul.f32 %v809_v24, %v1751_v0 }
 0x5b0   :  { %v844_v29 = vmul.f32 %v842_v17, %v838_v19  ;;  %v872_v30 = vmul.f32 %v836_v7, %v836_v7  ;;  %v835_v33 = vsub.f32 1.0, %v833_v26  ;;  %v843_v34 = vmul.f32 %v842_v17, %v837_v27 }
 0x5b1   :  { %v830_v8 = vrot.slane %v826_v3, %v1886_v53 }
 0x5b2   :  { %v1562_v31 = vpop.eup %1561  ;;  %v874_v35 = vmul.f32 %v872_v30, %v842_v17  ;;  %v871_v39 = vmul.f32 %v835_v33, %v835_v33 }
 0x5b3   :  { %v772_v38 = vmul.f32 %v1562_v31, %v1797_v50 }
 0x5b4   :  { %v1564_v40 = vpop.eup %1563  ;;  %v873_v44 = vmul.f32 %v871_v39, %v842_v17 }
 0x5b5   :  { %v1566_v41 = vpop.eup %1565  ;;  %v774_v43 = vsel %vm768_vm12, %v772_v38, 1.0  ;;  %v803_v54 = vmul.f32 %v1564_v40, %v1797_v50 }
 0x5b6   :  { %v776_v48 = vmul.f32 %v774_v43, %v760_v42  ;;  %v771_v51 = vmul.f32 %v1566_v41, %v1797_v50 }
 0x5b7   :  { %v804_v52 = vsel %vm801_vm0, %v803_v54, 1.0 }
 0x5b8   :  { %v805_v55 = vmul.f32 %v804_v52, %v798_v45  ;;  %v773_v46 = vsel %vm767_vm15, %v771_v51, 1.0 }
 0x5b9   :  { %v775_v58 = vmul.f32 %v773_v46, %v759_v56 }
 0x5ba   :  { %v813_v1 = vrot.slane %v805_v55, %v1886_v53 }
 0x5bc   :  { %v815_v59 = vmul.f32 %v813_v1, %v776_v48  ;;  %v814_v61 = vmul.f32 %v813_v1, %v775_v58  ;;  %v854_v60 = vmul.f32 %v836_v7, %v813_v1  ;;  %v853_v62 = vmul.f32 %v835_v33, %v813_v1 }
 0x5be   :  { %v819_v21 = vsel %vm665_vm13, %v815_v59, 0.0  ;;  %v816_v4 = vsel %vm661_vm14, %v814_v61, 0.0 }
 0x5bf   :  { %820 = vadd.xlane.f32.xlu1 %v819_v21  ;;  %817 = vadd.xlane.f32.xlu0 %v816_v4 }
 0x64c   :  { %v821_v49 = vpop.xlane.xlu1 %820  ;;  %v818_v6 = vpop.xlane.xlu0 %817 }
 0x64d   :  { %v823_v5 = vmul.f32 %v821_v49, %v1930_v37  ;;  %v822_v15 = vmul.f32 %v818_v6, %v1930_v37 }
 0x64f   :  { %v825_v10 = vadd.f32 1.0, %v823_v5  ;;  %v824_v12 = vadd.f32 1.0, %v822_v15 }
 0x651   :  { %v832_v13 = vadd.f32 %v830_v8, %v825_v10  ;;  %v846_v14 = vadd.f32 %v844_v29, %v825_v10  ;;  %v831_v57 = vadd.f32 %v830_v8, %v824_v12  ;;  %v845_v11 = vadd.f32 %v843_v34, %v824_v12 }
 0x653   :  { %v848_v16 = vmax.f32 %v846_v14, 1e-15  ;;  %v852_v25 = vmul.f32 %v832_v13, %v776_v48  ;;  %v860_v20 = vmul.f32 %v832_v13, %v832_v13  ;;  %v864_v22 = vmul.f32 2.0, %v832_v13 }
 0x654   :  { %v847_v28 = vmax.f32 %v845_v11, 1e-15  ;;  %v851_v0 = vmul.f32 %v831_v57, %v775_v58  ;;  %v859_v23 = vmul.f32 %v831_v57, %v831_v57  ;;  %v863_v24 = vmul.f32 2.0, %v831_v57 }
 0x655   :  { %1567 = vrcp.f32 %v848_v16  ;;  %v856_v9 = vadd.f32 %v854_v60, %v852_v25  ;;  %v862_v37 = vmul.f32 %v860_v20, %v2034_v2  ;;  %v866_v19 = vmul.f32 %v864_v22, %v836_v7 }
 0x656   :  { %1569 = vrcp.f32 %v847_v28  ;;  %v855_v53 = vadd.f32 %v853_v62, %v851_v0  ;;  %v861_v17 = vmul.f32 %v859_v23, %v2045_v63  ;;  %v865_v26 = vmul.f32 %v863_v24, %v835_v33 }
 0x657   :  { %v868_v27 = vmul.f32 %v866_v19, %v821_v49 }
 0x658   :  { %v867_v29 = vmul.f32 %v865_v26, %v818_v6 }
 0x659   :  { %v870_v30 = vadd.f32 %v868_v27, %v862_v37 }
 0x65a   :  { %v869_v32 = vadd.f32 %v867_v29, %v861_v17 }
 0x65b   :  { %v876_v34 = vadd.f32 %v874_v35, %v870_v30 }
 0x65c   :  { %v875_v31 = vadd.f32 %v873_v44, %v869_v32 }
 0x65d   :  { %v878_v36 = vmax.f32 %v876_v34, 0.0 }
 0x65e   :  { %v877_v38 = vmax.f32 %v875_v31, 0.0 }
 0x65f   :  { %v1568_v39 = vpop.eup %1567  ;;  %1571 = vrsqrt.f32 %v878_v36  ;;  %vm888_vm2 = vcmp.eq.f32.partialorder %v878_v36, inf  ;;  %v891_v63 = vand.u32 2147483648, %v878_v36  ;;  %vm890_vm3 = vcmp.eq.f32.partialorder %v878_v36, 0.0 }
 0x660   :  { %v1570_v40 = vpop.eup %1569  ;;  %1573 = vrsqrt.f32 %v877_v38  ;;  %v858_v41 = vmul.f32 %v1568_v39, %v856_v9  ;;  %vm881_vm4 = vcmp.eq.f32.partialorder %v877_v38, inf  ;;  %v884_v48 = vand.u32 2147483648, %v877_v38 }
 0x661   :  { %v857_v2 = vmul.f32 %v1570_v40, %v855_v53  ;;  %vm883_vm5 = vcmp.eq.f32.partialorder %v877_v38, 0.0 }
 0x669   :  { %v1572_v7 = vpop.eup %1571 }
 0x66a   :  { %v1574_v42 = vpop.eup %1573  ;;  %v887_v43 = vmul.f32 %v1572_v7, %v878_v36 }
 0x66b   :  { %v880_v33 = vmul.f32 %v1574_v42, %v877_v38 }
 0x66c   :  { %v889_v54 = vsel %vm888_vm2, %v878_v36, %v887_v43 }
 0x66d   :  { %v892_v35 = vsel %vm890_vm3, %v891_v63, %v889_v54  ;;  %v882_v44 = vsel %vm881_vm4, %v877_v38, %v880_v33 }
 0x66e   :  { %v894_v45 = vmul.f32 %v1568_v39, %v892_v35  ;;  %v885_v51 = vsel %vm883_vm5, %v884_v48, %v882_v44 }
 0x66f   :  { %v893_v52 = vmul.f32 %v1570_v40, %v885_v51 }
 0x670   :  { %v896_v55 = vmax.f32 %v894_v45, 1e-15 }
 0x671   :  { %v895_v56 = vmax.f32 %v893_v52, 1e-15 }
 0x672   :  { %vm898_vm6 = vcmp.gt.f32.partialorder %v896_v55, %v1797_v50  ;;  %1575 = vrcp.f32 %v896_v55 }
 0x673   :  { %v908_v46 = vsel %vm898_vm6, %v1797_v50, %v896_v55  ;;  %vm897_vm7 = vcmp.gt.f32.partialorder %v895_v56, %v1797_v50  ;;  %1577 = vrcp.f32 %v895_v56 }
 0x674   :  { %v910_v58 = vmul.f32 %v908_v46, %v1785_v18  ;;  %v907_v1 = vsel %vm897_vm7, %v1797_v50, %v895_v56 }
 0x675   :  { %v909_v59 = vmul.f32 %v907_v1, %v1785_v18 }
 0x676   :  { %v1356_v61 = vclamps-f32 %v910_v58, 0.9999999 }
 0x677   :  { %v1355_v60 = vclamps-f32 %v909_v59, 0.9999999 }
 0x678   :  { %v924_v62 = vadd.f32 1.0, %v1356_v61  ;;  %v934_v21 = vsub.f32 0.0, %v1356_v61  ;;  %v927_v13 = vmul.f32 -0.5, %v1356_v61  ;;  %v930_v23 = vand.u32 2147483647, %v1356_v61 }
 0x679   :  { %v915_v4 = vadd.f32 1.0, %v1355_v60  ;;  %v933_v3 = vsub.f32 0.0, %v1355_v60  ;;  %v918_v16 = vmul.f32 -0.5, %v1355_v60  ;;  %v921_v26 = vand.u32 2147483647, %v1355_v60 }
 0x67a   :  { %1579 = vlog2.f32 %v924_v62  ;;  %v944_v49 = vadd.f32 1.0, %v934_v21  ;;  %v947_v14 = vmul.f32 -0.5, %v934_v21  ;;  %v928_v22 = vadd.f32 1.0, %v927_v13 }
 0x67b   :  { %1581 = vlog2.f32 %v915_v4  ;;  %v935_v5 = vadd.f32 1.0, %v933_v3  ;;  %v938_v20 = vmul.f32 -0.5, %v933_v3  ;;  %v950_v24 = vand.u32 2147483647, %v934_v21 }
 0x67c   :  { %v1576_v6 = vpop.eup %1575  ;;  %1583 = vlog2.f32 %v944_v49  ;;  %v948_v28 = vadd.f32 1.0, %v947_v14  ;;  %v919_v9 = vadd.f32 1.0, %v918_v16  ;;  %v941_v27 = vand.u32 2147483647, %v933_v3 }
 0x67d   :  { %v1578_v15 = vpop.eup %1577  ;;  %v902_v8 = vmul.f32 %v1576_v6, %v1797_v50  ;;  %1585 = vlog2.f32 %v935_v5  ;;  %v939_v53 = vadd.f32 1.0, %v938_v20  ;;  %v929_v29 = vmul.f32 %v1356_v61, %v928_v22 }
 0x67e   :  { %v901_v10 = vmul.f32 %v1578_v15, %v1797_v50  ;;  %1587 = vrcp.f32 %v910_v58  ;;  %v949_v32 = vmul.f32 %v948_v28, %v934_v21  ;;  %vm931_vm8 = vcmp.lt.f32.partialorder %v930_v23, 0.0004427343 }
 0x67f   :  { %v904_v12 = vsel %vm898_vm6, %v902_v8, 1.0  ;;  %1589 = vrcp.f32 %v909_v59  ;;  %vm951_vm1 = vcmp.lt.f32.partialorder %v950_v24, 0.0004427343  ;;  %v920_v36 = vmul.f32 %v1355_v60, %v919_v9  ;;  %v1155_v60 = vld [vmem:[%s2195_s8] sm:$0x3] }
 0x680   :  { %v906_v57 = vmul.f32 %v904_v12, %v858_v41  ;;  %v903_v11 = vsel %vm897_vm7, %v901_v10, 1.0  ;;  %v940_v41 = vmul.f32 %v939_v53, %v933_v3  ;;  %vm922_vm9 = vcmp.lt.f32.partialorder %v921_v26, 0.0004427343 }
 0x681   :  { %v905_v25 = vmul.f32 %v903_v11, %v857_v2  ;;  %vm942_vm10 = vcmp.lt.f32.partialorder %v941_v27, 0.0004427343  ;;  %v1672_v59 = vmov 0.0|0.0   ;;  %v1674_v61 = vmov 0.0  }
 0x682   :  { %1422 = vmatprep.subr.bf16.mxu0 %v1672_v59  ;;  %1401 = vmatprep.mubr.msk.f32.mxu0 %vm1673_vm11, %v1674_v61 }
 0x683   :  { %1404 = vmatprep.subr.mxu1 %v1674_v61  ;;  %1406 = vmatprep.mubr.msk.f32.mxu1 %vm1673_vm11, %v1674_v61 }
 0x684   :  { %v1580_v0 = vpop.eup %1579 }
 0x685   :  { %v1582_v37 = vpop.eup %1581  ;;  %v926_v19 = vmul.f32 0.6931472, %v1580_v0 }
 0x686   :  { %v1584_v17 = vpop.eup %1583  ;;  %v917_v34 = vmul.f32 0.6931472, %v1582_v37 }
 0x687   :  { %v946_v30 = vmul.f32 0.6931472, %v1584_v17  ;;  %v1586_v31 = vpop.eup %1585  ;;  %v932_v38 = vsel %vm931_vm8, %v929_v29, %v926_v19 }
 0x688   :  { %v937_v40 = vmul.f32 0.6931472, %v1586_v31  ;;  %v923_v7 = vsel %vm922_vm9, %v920_v36, %v917_v34  ;;  %v1588_v33 = vpop.eup %1587  ;;  %vm1318_vm9 = vcmask 8192  }
 0x689   :  { %v952_v39 = vsel %vm951_vm1, %v949_v32, %v946_v30  ;;  %v1590_v35 = vpop.eup %1589  ;;  %vm1424_vm1 = vmpackc.low %vm661_vm14, %vm661_vm14 }
 0x68a   :  { %v954_v2 = vsub.f32 %v932_v38, %v952_v39  ;;  %v943_v42 = vsel %vm942_vm10, %v940_v41, %v937_v40 }
 0x68b   :  { %v953_v63 = vsub.f32 %v923_v7, %v943_v42 }
 0x68c   :  { %v956_v43 = vmul.f32 0.5, %v954_v2 }
 0x68d   :  { %v955_v48 = vmul.f32 0.5, %v953_v63 }
 0x68e   :  { %v960_v54 = vmul.f32 %v1588_v33, %v956_v43 }
 0x68f   :  { %v959_v45 = vmul.f32 %v1590_v35, %v955_v48 }
 0x690   :  { %v962_v44 = vmul.f32 %v960_v54, %v906_v57 }
 0x691   :  { %v961_v52 = vmul.f32 %v959_v45, %v905_v25 }
 0x692   :  { %v2093_v51 = vmax.f32 %v962_v44, 0.0 }
 0x693   :  { %v2097_v56 = vmax.f32 %v961_v52, 0.0 }
 0x694   :  { %v966_v55 = vmul.f32 %v2093_v51, %v2093_v51 }
 0x695   :  { %v965_v58 = vmul.f32 %v2097_v56, %v2097_v56 }
 0x696   :  { %v970_v46 = vsel %vm665_vm13, %v966_v55, 0.0  ;;  %vm1156_vm13 = vcmask 97280  }
 0x697   :  { %971 = vadd.xlane.f32.xlu1 %v970_v46  ;;  %v967_v1 = vsel %vm661_vm14, %v965_v58, 0.0  ;;  %1405 = vmatpush3.xpose.msk.msra.mxu1 %vm1156_vm13, %v1155_v60 }
 0x698   :  { %968 = vadd.xlane.f32.xlu0 %v967_v1  ;;  %1409 = vmatprep.subr.mxu1 %v1674_v61 }
 0x724   :  { %v972_v62 = vpop.xlane.xlu1 %971 }
 0x725   :  { %1591 = vrsqrt.f32 %v972_v62  ;;  %v969_v21 = vpop.xlane.xlu0 %968  ;;  %vm982_vm12 = vcmp.eq.f32.partialorder %v972_v62, inf  ;;  %v985_v6 = vand.u32 2147483648, %v972_v62  ;;  %vm984_vm0 = vcmp.eq.f32.partialorder %v972_v62, 0.0 }
 0x726   :  { %1593 = vrsqrt.f32 %v969_v21  ;;  %vm975_vm15 = vcmp.eq.f32.partialorder %v969_v21, inf  ;;  %v978_v10 = vand.u32 2147483648, %v969_v21  ;;  %vm977_vm2 = vcmp.eq.f32.partialorder %v969_v21, 0.0 }
 0x72f   :  { %v1592_v4 = vpop.eup %1591 }
 0x730   :  { %v981_v3 = vmul.f32 %v1592_v4, %v972_v62  ;;  %v1594_v49 = vpop.eup %1593 }
 0x731   :  { %v974_v15 = vmul.f32 %v1594_v49, %v969_v21 }
 0x732   :  { %v983_v5 = vsel %vm982_vm12, %v972_v62, %v981_v3 }
 0x733   :  { %v986_v8 = vsel %vm984_vm0, %v985_v6, %v983_v5  ;;  %v976_v13 = vsel %vm975_vm15, %v969_v21, %v974_v15 }
 0x734   :  { %v988_v12 = vmax.f32 %v986_v8, 1e-15  ;;  %v979_v14 = vsel %vm977_vm2, %v978_v10, %v976_v13 }
 0x735   :  { %v987_v11 = vmax.f32 %v979_v14, 1e-15 }
 0x736   :  { %v990_v57 = vmul.f32 %v988_v12, %v1785_v18 }
 0x737   :  { %v989_v25 = vmul.f32 %v987_v11, %v1785_v18 }
 0x738   :  { %v1358_v16 = vclamps-f32 %v990_v57, 15.0 }
 0x739   :  { %v1357_v20 = vclamps-f32 %v989_v25, 15.0 }
 0x73a   :  { %1595 = vtanh.f32 %v1358_v16 }
 0x73b   :  { %1597 = vtanh.f32 %v1357_v20 }
 0x73c   :  { %1599 = vrcp.f32 %v990_v57 }
 0x73d   :  { %1601 = vrcp.f32 %v989_v25 }
 0x744   :  { %v1596_v22 = vpop.eup %1595 }
 0x745   :  { %v1004_v28 = vmul.f32 %v1596_v22, %v1794_v47  ;;  %v1598_v0 = vpop.eup %1597 }
 0x746   :  { %v1003_v23 = vmul.f32 %v1598_v0, %v1794_v47  ;;  %v1600_v39 = vpop.eup %1599 }
 0x747   :  { %v2117_v24 = vmax.f32 %v1004_v28, 1e-15  ;;  %v1602_v41 = vpop.eup %1601  ;;  %v1000_v45 = vmul.f32 %v1600_v39, %v1596_v22 }
 0x748   :  { %v2119_v9 = vmax.f32 %v1003_v23, 1e-15  ;;  %v999_v1 = vmul.f32 %v1602_v41, %v1598_v0 }
 0x749   :  { %vm1008_vm3 = vcmp.gt.f32.partialorder %v2117_v24, %v1797_v50  ;;  %v1002_v25 = vmul.f32 %v1000_v45, %v2093_v51 }
 0x74a   :  { %v1018_v37 = vsel %vm1008_vm3, %v1797_v50, %v2117_v24  ;;  %vm1007_vm4 = vcmp.gt.f32.partialorder %v2119_v9, %v1797_v50  ;;  %v1001_v0 = vmul.f32 %v999_v1, %v2097_v56  ;;  %v1074_v56 = vld [vmem:[%s2194_s7] sm:$0x3] }
 0x74b   :  { %v1020_v19 = vmul.f32 %v1018_v37, %v1785_v18  ;;  %v1017_v47 = vsel %vm1007_vm4, %v1797_v50, %v2119_v9 }
 0x74c   :  { %v1019_v53 = vmul.f32 %v1017_v47, %v1785_v18 }
 0x74d   :  { %v1360_v17 = vclamps-f32 %v1020_v19, 0.9999999 }
 0x74e   :  { %v1359_v26 = vclamps-f32 %v1019_v53, 0.9999999 }
 0x74f   :  { %v1034_v27 = vadd.f32 1.0, %v1360_v17  ;;  %v1044_v29 = vsub.f32 0.0, %v1360_v17  ;;  %v1037_v18 = vmul.f32 -0.5, %v1360_v17  ;;  %v1040_v7 = vand.u32 2147483647, %v1360_v17 }
 0x750   :  { %v1025_v30 = vadd.f32 1.0, %v1359_v26  ;;  %v1043_v32 = vsub.f32 0.0, %v1359_v26  ;;  %v1028_v36 = vmul.f32 -0.5, %v1359_v26  ;;  %v1031_v52 = vand.u32 2147483647, %v1359_v26 }
 0x751   :  { %1603 = vlog2.f32 %v1034_v27  ;;  %v1054_v34 = vadd.f32 1.0, %v1044_v29  ;;  %v1057_v38 = vmul.f32 -0.5, %v1044_v29  ;;  %v1038_v63 = vadd.f32 1.0, %v1037_v18 }
 0x752   :  { %1605 = vrcp.f32 %v2117_v24  ;;  %v1045_v31 = vadd.f32 1.0, %v1043_v32  ;;  %v1048_v40 = vmul.f32 -0.5, %v1043_v32  ;;  %v1029_v43 = vadd.f32 1.0, %v1028_v36 }
 0x753   :  { %1607 = vlog2.f32 %v1025_v30  ;;  %v1058_v33 = vadd.f32 1.0, %v1057_v38  ;;  %v1060_v35 = vand.u32 2147483647, %v1044_v29  ;;  %v1051_v46 = vand.u32 2147483647, %v1043_v32 }
 0x754   :  { %1609 = vrcp.f32 %v2119_v9  ;;  %v1049_v48 = vadd.f32 1.0, %v1048_v40  ;;  %vm2140_vm5 = vcmp.lt.f32.partialorder %v1040_v7, 0.0004427343  ;;  %v1030_v4 = vmul.f32 %v1359_v26, %v1029_v43 }
 0x755   :  { %1611 = vlog2.f32 %v1054_v34  ;;  %v1039_v3 = vmul.f32 %v1360_v17, %v1038_v63  ;;  %v1059_v6 = vmul.f32 %v1058_v33, %v1044_v29  ;;  %vm1061_vm6 = vcmp.lt.f32.partialorder %v1060_v35, 0.0004427343  ;;  %v1073_v29 = vld [vmem:[%s2196_s9] sm:$0x1]  ;;  %s1326_s9 = sshll.u32 %s1675_s4, 4  ;;  %s1327_s9 = int_to_ptr.vmem [resolvable:$true] %s1326_s9 }
 0x756   :  { %1613 = vlog2.f32 %v1045_v31  ;;  %v1050_v8 = vmul.f32 %v1049_v48, %v1043_v32  ;;  %vm1032_vm7 = vcmp.lt.f32.partialorder %v1031_v52, 0.0004427343  ;;  %vm1052_vm8 = vcmp.lt.f32.partialorder %v1051_v46, 0.0004427343  ;;  %s1645_s17 = scalar_lea.vmem %s1327_s9, 16  ;;  %s1649_s18 = scalar_lea.vmem %s1327_s9, 32 }
 0x757   :  { %1615 = vrcp.f32 %v1020_v19  ;;  %v1310_v31 = vstv %s2188_s1  ;;  %p1646_p8 = scmp.ne.s32.totalorder %s1327_s9, %s1645_s17  ;;  %p1650_p9 = scmp.lt.s32.totalorder %s1327_s9, %s1327_s9 }
 0x758   :  { %1617 = vrcp.f32 %v1019_v53  ;;  %p1651_p10 = scmp.lt.s32.totalorder %s1649_s18, %s1645_s17 }
 0x75a   :  { %p1652_p11 = por %p1651_p10, %p1650_p9 }
 0x75b   :  { %v1604_v2 = vpop.eup %1603 }
 0x75c   :  { %v1606_v42 = vpop.eup %1605  ;;  %v1036_v55 = vmul.f32 0.6931472, %v1604_v2  ;;  %p1653_p12 = pnand %p1652_p11, %p1646_p8 }
 0x75d   :  { %v1608_v54 = vpop.eup %1607  ;;  %v1012_v59 = vmul.f32 %v1606_v42, %v1797_v50 }
 0x75e   :  { %v1610_v44 = vpop.eup %1609  ;;  %v1027_v60 = vmul.f32 0.6931472, %v1608_v54  ;;  %v1042_v10 = vsel %vm2140_vm5, %v1039_v3, %v1036_v55 }
 0x75f   :  { %v1612_v58 = vpop.eup %1611  ;;  %v1011_v5 = vmul.f32 %v1610_v44, %v1797_v50  ;;  %v1014_v11 = vsel %vm1008_vm3, %v1012_v59, 1.0  ;;  %v1075_v50 = vld [vmem:[%s2197_s10] sm:$0x1] }
 0x760   :  { %v1614_v21 = vpop.eup %1613  ;;  %v1056_v49 = vmul.f32 0.6931472, %v1612_v58  ;;  %v1033_v13 = vsel %vm1032_vm7, %v1030_v4, %v1027_v60  ;;  %v1016_v19 = vmul.f32 %v1014_v11, %v1002_v25 }
 0x761   :  { %v1047_v15 = vmul.f32 0.6931472, %v1614_v21  ;;  %v1013_v20 = vsel %vm1007_vm4, %v1011_v5, 1.0  ;;  %v1616_v28 = vpop.eup %1615 }
 0x762   :  { %v1062_v12 = vsel %vm1061_vm6, %v1059_v6, %v1056_v49  ;;  %v1618_v37 = vpop.eup %1617  ;;  %v1015_v53 = vmul.f32 %v1013_v20, %v1001_v0 }
 0x763   :  { %v1053_v14 = vsel %vm1052_vm8, %v1050_v8, %v1047_v15  ;;  %v1064_v57 = vsub.f32 %v1042_v10, %v1062_v12 }
 0x764   :  { %v1063_v16 = vsub.f32 %v1033_v13, %v1053_v14 }
 0x765   :  { %v1066_v22 = vmul.f32 0.5, %v1064_v57 }
 0x766   :  { %v1065_v23 = vmul.f32 0.5, %v1063_v16 }
 0x767   :  { %v1070_v47 = vmul.f32 %v1616_v28, %v1066_v22 }
 0x768   :  { %v1069_v17 = vmul.f32 %v1618_v37, %v1065_v23 }
 0x769   :  { %v1072_v26 = vmul.f32 %v1070_v47, %v1016_v19 }
 0x76a   :  { %v1071_v24 = vmul.f32 %v1069_v17, %v1015_v53 }
 0x76c   :  { %v1423_v51 = vpack.c.bf16 %v1072_v26, %v1071_v24 }
 0x76e   :  { %1425 = vmatpush3.bf16.xpose.msk.msra.mxu0 %vm1424_vm1, %v1423_v51 }
 0x775   :  { %1402 = vmatmul.mubr.msk.f32.vlgmr.msra.gmra.mrb[2].mxu0 %vm661_vm14, %v1075_v50 }
 0x848   :  { %v1151_v9 = vpop.f32.mrb[2].mxu0 }
 0x849   :  { %v1403_v27 = vpop.f32.mrb[3].mxu0  ;;  %1407 = vmatmul.mubr.msk.f32.vlgmr.msra.gmra.mrb[2].mxu1 %vm1156_vm13, %v1151_v9 }
 0x84a   :  { %1410 = vmatpush3.xpose.msk.msra.mxu1 %vm661_vm14, %v1074_v56  ;;  %1411 = vmatprep.mubr.msk.f32.mxu1 %vm1673_vm11, %v1674_v61 }
 0x84d   :  { %1412 = vmatmul.mubr.msk.f32.vlgmr.msra.gmra.mrb[4].mxu1 %vm661_vm14, %v1073_v29 }
 0x91c   :  { %v1229_v30 = vpop.f32.mrb[2].mxu1 }
 0x91d   :  { %v1408_v32 = vpop.f32.mrb[3].mxu1 }
 0x920   :  { %v1305_v34 = vpop.f32.mrb[4].mxu1 }
 0x921   :  { %v1306_v36 = vadd.f32 %v1305_v34, %v1229_v30  ;;  %v1413_v18 = vpop.f32.mrb[5].mxu1 }
 0x923   :  { %v1311_v38 = vadd.f32 %v1310_v31, %v1306_v36 }
 0x925   :  { %v1312_v39 = vsub.f32 0.0, %v1311_v38 }
 0x927   :  { %v1313_v40 = vmul.f32 1.442695, %v1312_v39 }
 0x929   :  { %1619 = vpow2.f32 %v1313_v40 }
 0x933   :  { %v1620_v61 = vpop.eup %1619 }
 0x934   :  { %v1315_v41 = vadd.f32 1.0, %v1620_v61 }
 0x936   :  { %1621 = vrcp.f32 %v1315_v41 }
 0x940   :  { %v1622_v2 = vpop.eup %1621 }
 0x941   :  { %1319 = vst.msk [vmem:[#allocation7] sm:$0x1] %vm1318_vm9, %v1622_v2 }
 0x942   :  { %1656 = shalt.err (!%p1653_p12)
}
 0x943   :  { %s1657_s3 = scalar_lea.hbm %s2198_s11, 16 }
 0x944   :  { %p1658_p13 = scmp.ne.s32.totalorder %s2198_s11, %s1657_s3  ;;  %p1661_p0 = scmp.lt.u32.totalorder %s1657_s3, %s2198_s11 }
 0x946   :  { %p1663_p1 = pnand %p1661_p0, %p1658_p13 }
 0x948   :  { %1666 = shalt.err (!%p1663_p1)
}
 0x949   :  { %1329 = dma.vmem_to_hbm [thread:$0]  %s1327_s9, 16, %s2198_s11, [#allocation6]  }
 0x94a   :  { %1669 = dma.done.wait [#allocation6], 16  }
 0x94b   :  { %1670 = vsyncadd [#allocation6], 4294967280 }
 0x94c   :  { %1333 = vsyncpa [#allocation5], 1 }
 0x94d   :  { %1334 = vsyncpa [#allocation6], 1 }

</bundles_post_ra>
